<compile_context>
chip_gen: v7x
topology: tpu7x:2x2x1
jax: 0.10.0
libtpu: 0.0.40
codegen_flags: <defaults>
</compile_context>

<pallas_src>
import functools

import jax
import jax.numpy as jnp
from jax.experimental import pallas as pl
from jax.experimental.pallas import tpu as pltpu

NUM_CLASSES = 20
EPS = 1e-12  # torch.nn.functional.normalize default eps


def isomax_kernel(x_ref, pn_ref, nst_ref, o_ref, *, hw):
    """x_ref:  VMEM (1, C, H, W) feature block (one batch element)
       pn_ref: VMEM (K, C) L2-normalized prototypes
       nst_ref: SMEM (1,) scalar = -|distance_scale| / temperature
       o_ref:  VMEM (1, K, H*W) logits block (lane-dense)."""
    x = x_ref[0].astype(jnp.float32)                          # (C, H, W)

    # --- feature normalization: F.normalize(dim=1) on the (B, W, H, C)-transposed
    #     view == L2-normalize along the original W axis, per (c, h) row. ----------
    sumsq = jnp.sum(x * x, axis=-1, keepdims=True)            # (C, H, 1)
    xn = x * jax.lax.rsqrt(jnp.maximum(sumsq, EPS * EPS))     # (C, H, W)
    xn = xn.reshape(x.shape[0], hw)                           # (C, H*W) lane-dense

    # --- exact euclidean cdist (direct (a-b)^2 sum, matching torch's
    #     'donot_use_mm_for_euclid_dist'), vectorized over K, C and H*W. -----------
    pn = pn_ref[...]                                          # (K, C)
    diff = xn[jnp.newaxis, :, :] - pn[:, :, jnp.newaxis]      # (K, C, H*W)
    d = jnp.sqrt(jnp.sum(diff * diff, axis=1))                # (K, H*W)

    # single lane-dense store of the whole (K, H*W) slab, scale applied once
    o_ref[0] = (nst_ref[0] * d).astype(o_ref.dtype)


def isomax_plus_first_part(features, prototypes, distance_scale, temperature=1.0):
    """features: (B, C, H, W) f32; prototypes: (K, C); distance_scale: (1,).
    Returns logits (B, K, H, W), identical to the PyTorch module's forward."""
    B, C, H, W = features.shape
    K, Cp = prototypes.shape
    assert Cp == C
    HW = H * W

    # parameter prep (glue): L2-normalize prototypes along the feature dim (torch exact:
    # p / max(||p||, eps)), and fold -|scale|/T into one scalar.
    p_norm = jnp.sqrt(jnp.sum(prototypes * prototypes, axis=-1, keepdims=True))
    pn = (prototypes / jnp.maximum(p_norm, EPS)).astype(jnp.float32)          # (K, C)
    neg_scale_over_t = (
        -(jnp.abs(distance_scale.astype(jnp.float32)) / jnp.float32(temperature))
    ).reshape(1)

    kernel = functools.partial(isomax_kernel, hw=HW)

    out = pl.pallas_call(
        kernel,
        out_shape=jax.ShapeDtypeStruct((B, K, HW), features.dtype),
        grid=(B,),
        in_specs=[
            pl.BlockSpec((1, C, H, W), lambda b: (b, 0, 0, 0)),   # features
            pl.BlockSpec((K, C), lambda b: (0, 0)),               # prototypes in VMEM
            pl.BlockSpec(memory_space=pltpu.MemorySpace.SMEM),    # folded scalar
        ],
        out_specs=pl.BlockSpec((1, K, HW), lambda b: (b, 0, 0)),
        compiler_params=pltpu.CompilerParams(dimension_semantics=("parallel",)),
    )(features, pn, neg_scale_over_t)

    return out.reshape(B, K, H, W)
    # TODO(synk): for real segmentation resolutions (H, W >= 256) add an H-tile grid
    # axis so the double-buffered (K, H*W) output block stays within v7x's 64 MiB VMEM.


def _reference(x, prototypes, scale, temperature):
    """Pure-JAX transcription of the PyTorch forward, for validation."""
    f = jnp.transpose(x, (0, 3, 2, 1))                                    # (B, W, H, C)
    fn = f / jnp.maximum(jnp.linalg.norm(f, axis=1, keepdims=True), EPS)  # normalize dim=1
    pn = prototypes / jnp.maximum(
        jnp.linalg.norm(prototypes, axis=1, keepdims=True), EPS)
    diff = fn[:, :, :, None, :] - pn[None, None, None, :, :]              # (B, W, H, K, C)
    d = jnp.sqrt(jnp.sum(diff * diff, axis=-1))                           # (B, W, H, K)
    d = jnp.abs(scale[0]) * d
    d = jnp.transpose(d, (0, 3, 2, 1))                                    # (B, K, H, W)
    return -d / temperature


if __name__ == "__main__":
    key = jax.random.PRNGKey(0)
    k_feat, k_proto = jax.random.split(key)

    B, C, H, W = 2, 4, 16, 16        # batch=2, num_features=4, spatial=16x16
    num_classes = NUM_CLASSES
    temperature = 1.0

    # deterministic "parameters" per the module's __init__:
    #   prototypes ~ N(0, 1), distance_scale = 1.0
    features = jax.random.normal(k_feat, (B, C, H, W), dtype=jnp.float32)
    prototypes = jax.random.normal(k_proto, (num_classes, C), dtype=jnp.float32)
    distance_scale = jnp.ones((1,), dtype=jnp.float32)

    logits = isomax_plus_first_part(features, prototypes, distance_scale, temperature)
    logits = jax.block_until_ready(logits)

    ref = _reference(features, prototypes, distance_scale, temperature)
    assert logits.shape == (B, num_classes, H, W)
    assert jnp.allclose(logits, ref, rtol=1e-5, atol=1e-5)

    print("KERNEL_OK")
</pallas_src>

<mosaic_0001>
module attributes {stable_mosaic.version = 11 : i64} {
  func.func @isomax_kernel(%arg0: i32, %arg1: memref<1x4x16x16xf32, #tpu.memory_space<vmem>>, %arg2: memref<20x4xf32, #tpu.memory_space<vmem>>, %arg3: memref<1xf32, #tpu.memory_space<smem>>, %arg4: memref<1x20x256xf32, #tpu.memory_space<vmem>>) attributes {dimension_semantics = [#tpu.dimension_semantics<parallel>], iteration_bounds = array<i64: 2>, scalar_prefetch = 0 : i64, scratch_operands = 0 : i64, tpu.core_type = #tpu.core_type<tc>, window_params = [{transform_indices = @transform_0, window_bounds = array<i64: 1, 4, 16, 16>}, {pipeline_mode = #tpu.pipeline_mode<synchronous>, transform_indices = @transform_1, window_bounds = array<i64: 20, 4>}, {transform_indices = @transform_2, window_bounds = array<i64: 1>}, {transform_indices = @transform_3, window_bounds = array<i64: 1, 20, 256>}]} {
    %c0 = arith.constant 0 : index
    %c0_0 = arith.constant 0 : index
    %c0_1 = arith.constant 0 : index
    %c0_2 = arith.constant 0 : index
    %0 = vector.load %arg1[%c0, %c0_0, %c0_1, %c0_2] : memref<1x4x16x16xf32, #tpu.memory_space<vmem>>, vector<1x4x16x16xf32>
    %1 = vector.shape_cast %0 : vector<1x4x16x16xf32> to vector<4x16x16xf32>
    %2 = arith.mulf %1, %1 : vector<4x16x16xf32>
    %cst = arith.constant dense<0.000000e+00> : vector<4x16xf32>
    %3 = vector.multi_reduction <add>, %2, %cst [2] : vector<4x16x16xf32> to vector<4x16xf32>
    %4 = vector.shape_cast %3 : vector<4x16xf32> to vector<4x16x1xf32>
    %cst_3 = arith.constant 1.000000e-24 : f32
    %5 = vector.broadcast %cst_3 : f32 to vector<4x16x1xf32>
    %6 = arith.maximumf %4, %5 : vector<4x16x1xf32>
    %7 = math.rsqrt %6 : vector<4x16x1xf32>
    %8 = vector.broadcast %7 : vector<4x16x1xf32> to vector<4x16x16xf32>
    %9 = arith.mulf %1, %8 : vector<4x16x16xf32>
    %10 = vector.shape_cast %9 : vector<4x16x16xf32> to vector<4x256xf32>
    %c0_4 = arith.constant 0 : index
    %c0_5 = arith.constant 0 : index
    %11 = vector.load %arg2[%c0_4, %c0_5] : memref<20x4xf32, #tpu.memory_space<vmem>>, vector<20x4xf32>
    %12 = vector.shape_cast %10 : vector<4x256xf32> to vector<1x4x256xf32>
    %13 = vector.shape_cast %11 : vector<20x4xf32> to vector<20x4x1xf32>
    %14 = vector.broadcast %12 : vector<1x4x256xf32> to vector<20x4x256xf32>
    %15 = vector.broadcast %13 : vector<20x4x1xf32> to vector<20x4x256xf32>
    %16 = arith.subf %14, %15 : vector<20x4x256xf32>
    %17 = arith.mulf %16, %16 : vector<20x4x256xf32>
    %cst_6 = arith.constant dense<0.000000e+00> : vector<20x256xf32>
    %18 = vector.multi_reduction <add>, %17, %cst_6 [1] : vector<20x4x256xf32> to vector<20x256xf32>
    %19 = math.sqrt %18 : vector<20x256xf32>
    %c0_7 = arith.constant 0 : index
    %20 = memref.load %arg3[%c0_7] : memref<1xf32, #tpu.memory_space<smem>>
    %21 = vector.broadcast %20 : f32 to vector<20x256xf32>
    %22 = arith.mulf %21, %19 : vector<20x256xf32>
    %c0_8 = arith.constant 0 : index
    %c0_9 = arith.constant 0 : index
    %c0_10 = arith.constant 0 : index
    %23 = vector.load %arg4[%c0_8, %c0_9, %c0_10] : memref<1x20x256xf32, #tpu.memory_space<vmem>>, vector<1x20x256xf32>
    %24 = vector.shape_cast %23 : vector<1x20x256xf32> to vector<20x256xf32>
    %25 = vector.shape_cast %22 : vector<20x256xf32> to vector<1x20x256xf32>
    tpu.vector_store %arg4[%c0_8, %c0_9, %c0_10], %25 {strides = array<i32>} : memref<1x20x256xf32, #tpu.memory_space<vmem>>, vector<1x20x256xf32>,
    return
  }
  func.func @transform_0(%arg0: i32) -> (i32, i32, i32, i32) {
    %c0_i32 = arith.constant 0 : i32
    %c0_i32_0 = arith.constant 0 : i32
    %c0_i32_1 = arith.constant 0 : i32
    %c0_i32_2 = arith.constant 0 : i32
    return %arg0, %c0_i32, %c0_i32_0, %c0_i32_1 : i32, i32, i32, i32
  }
  func.func @transform_1(%arg0: i32) -> (i32, i32) {
    %c0_i32 = arith.constant 0 : i32
    %c0_i32_0 = arith.constant 0 : i32
    %c0_i32_1 = arith.constant 0 : i32
    return %c0_i32, %c0_i32_0 : i32, i32
  }
  func.func @transform_2(%arg0: i32) -> i32 {
    %c0_i32 = arith.constant 0 : i32
    %c0_i32_0 = arith.constant 0 : i32
    return %c0_i32 : i32
  }
  func.func @transform_3(%arg0: i32) -> (i32, i32, i32) {
    %c0_i32 = arith.constant 0 : i32
    %c0_i32_0 = arith.constant 0 : i32
    %c0_i32_1 = arith.constant 0 : i32
    return %arg0, %c0_i32, %c0_i32_0 : i32, i32, i32
  }
}

</mosaic_0001>

<bundles_post_ra>
// kernel: tpu_custom_call.1
= control target key start
LH: loop header
LB: loop body
LE: loop exit
PB: predicated region body
PF: predicated region fallthrough
CT: control target
= control target key end

     0   :  { %s2632_s0 = inlined_call_operand.hbm [shape: f32[2,4,16,16], index: 0, kind: input, shape index: {}]   ;;  %s2633_s1 = inlined_call_operand.vmem [shape: f32[20,4], index: 1, kind: input, shape index: {}]   ;;  %s2634_s2 = inlined_call_operand.<no memory space> [shape: f32[1], index: 2, kind: input, shape index: {}]   ;;  %s2635_s3 = inlined_call_operand.vmem [shape: f32[2,20,256], index: 3, kind: output, shape index: {}]  }
   0x1   :  { %8 = sst [smem:[#allocation2]] %s2634_s2 }
   0x2   :  { %9 = vsyncpa [#allocation4], 0 }
   0x3   :  { %11 = vsyncpa [#allocation4 + $0x1], 0  ;;  %s1717_s14 = smov 0   ;;  %s1719_s15 = smov 0  }
   0x4   :  { %s1721_s16 = smov 0   ;;  %s1723_s17 = smov 0  }
   0x5 LB: > { %s1736_s2 = sadd.s32 4294967295, %s1679_s17   ;;  %s1739_s18 = sadd.s32 1, %s1679_s17   ;;  %s1679_s17 = sphi %s1723_s17, %s2697_s17   ;;  %s1675_s16 = sphi %s1721_s16, %s2696_s16   ;;  %s1671_s15 = sphi %s1719_s15, %s2695_s15   ;;  %s1667_s14 = sphi %s1717_s14, %s2694_s14  }
   0x6   : > { %s21_s19 = ssub.s32 %s1679_s17, %s1739_s18  ;;  %s24_s20 = sadd.s32 1, %s1675_s16 }
   0x7   : > { %p22_p0 = scmp.eq.s32.totalorder %s21_s19, 0  ;;  %p31_p1 = scmp.ne.s32.totalorder %s1675_s16, %s1671_s15 }
   0x8   : > { %p32_p2 = scmp.eq.s32.totalorder %s1679_s17, 0  ;;  %p37_p3 = scmp.ne.s32.totalorder %s1671_s15, %s1667_s14 }
   0x9   : > { %s1749_s21 = scalar_select %p22_p0, %s1675_s16, %s24_s20  }
   0xa   : > { %p33_p4 = por %p32_p2, %p31_p1  ;;  %p38_p5 = scmp.eq.s32.totalorder %s1736_s2, 0 }
   0xb   : > { %p1474_p6 = scmp.lt.s32.totalorder %s1679_s17, 2  ;;  %s135_s23 = sand.u32 1, %s1675_s16  }
   0xc   : > { %p1753_p7 = por %p38_p5, %p37_p3  ;;  %s1458_s24 = sshll.u32 %s135_s23, 6 }
   0xd   : > { %s1466_s25 = sshll.u32 %s1679_s17, 10  ;;  %s139_s29 = scalar_lea.vmem [#allocation3], %s1458_s24 }
   0xe   : > { %s1762_s28 = scalar_lea.hbm %s2632_s0, %s1466_s25  ;;  %s146_s30 = sshll.u32 %s139_s29, 4  ;;  %s1764_s30 = int_to_ptr.vmem [resolvable:$true] %s146_s30 }
   0xf   : > { %p1766_p8 = pnand %p1474_p6, %p33_p4  ;;  %s1771_s5 = scalar_lea.sflag [#allocation4], %s135_s23 }
  0x10   : > { %s1615_s6 = scalar_lea.hbm %s1762_s28, 1024  ;;  %s1620_s9 = scalar_lea.hbm %s2632_s0, 2048 }
  0x11   : > { %p1616_p10 = scmp.ne.s32.totalorder %s1762_s28, %s1615_s6  ;;  %p1617_p11 = pneg %p1766_p8 }
  0x12   : > { %p1621_p0 = scmp.lt.u32.totalorder %s1762_s28, %s2632_s0  ;;  %p1622_p1 = scmp.lt.u32.totalorder %s1620_s9, %s1615_s6 }
  0x13   : > { %p1618_p12 = pnand %p1617_p11, %p1616_p10  ;;  %p1624_p3 = scmp.lt.u32.totalorder %s1615_s6, %s1762_s28 }
  0x14   : > { %p1623_p2 = por %p1622_p1, %p1621_p0 }
  0x15   : > { %p1619_p13 = pneg %p1618_p12 }
  0x16   : > { %p1625_p4 = por %p1624_p3, %p1623_p2 }
  0x18   : > { %p1626_p5 = pnand %p1625_p4, %p1619_p13 }
  0x1a   : > { %1629 = shalt.err (!%p1626_p5)
}
  0x1b   : > { %s1630_s12 = scalar_lea.vmem %s1764_s30, 1024  ;;  %s1681_s13 = smov [#allocation3]  }
  0x1c   : > { %p1631_p6 = scmp.ne.s32.totalorder %s1764_s30, %s1630_s12  ;;  %s1635_s14 = sshll.u32 %s1681_s13, 4  ;;  %s1636_s14 = int_to_ptr.vmem [resolvable:$false] %s1635_s14 }
  0x1d   : > { %s1637_s19 = scalar_lea.vmem %s1636_s14, 2048  ;;  %p1638_p9 = scmp.lt.s32.totalorder %s1764_s30, %s1636_s14 }
  0x1e   : > { %p1633_p10 = pnand %p1631_p6, %p1617_p11  ;;  %p1639_p0 = scmp.lt.s32.totalorder %s1637_s19, %s1630_s12 }
  0x20   : > { %p1634_p12 = pneg %p1633_p10  ;;  %p1640_p1 = por %p1639_p0, %p1638_p9 }
  0x22   : > { %p1641_p2 = pnand %p1640_p1, %p1634_p12 }
  0x24   : > { %1644 = shalt.err (!%p1641_p2)
}
  0x25   : > { %s1682_s20 = smov 128   ;;  %s1683_s23 = smov 8  }
  0x26   : > { %1473 = dma.hbm_to_vmem [thread:$0]  (!%p1766_p8), %s1762_s28, 1024, %s1764_s30, %s1771_s5, %s1682_s20, %s1682_s20, %s1683_s23  }
  0x27   : > { %p154_p11 = scmp.lt.s32.totalorder %s1679_s17, 3  ;;  %p2645_p13 = scmp.ge.s32.totalorder %s1679_s17, 1 }
  0x29   : > { %p155_p3 = pnand %p2645_p13, %p154_p11 }
  0x2a   : > { %s160_s24 = sand.u32 (!%p155_p3), 1, %s1671_s15  }
  0x2b   : > { %158 = sbr.rel (%p155_p3) target bundleno = 563 (0x233), region = 32  ;;  %s1462_s25 = sshll.u32 (!%p155_p3), %s160_s24, 6 }
  0x2c   : > { %s161_s26 = scalar_lea.sflag (!%p155_p3), [#allocation4], %s160_s24  ;;  %s164_s27 = scalar_lea.vmem (!%p155_p3), [#allocation3], %s1462_s25 }
  0x32   : > { %1662 = dma.done.wait (%p1753_p7), %s161_s26, 1024  }
  0x33   : > { %1664 = vsyncadd (%p1753_p7), %s161_s26, 4294966272  ;;  %v1807_v0 = vld [vmem:[%s164_s27 + $0x10] sm:$0xff]  ;;  %vm208_vm0 = vcmask 130048   ;;  %v1809_v1 = vld [vmem:[%s164_s27] sm:$0xff]  ;;  %v262_v24 = vlaneseq  ;;  %s1686_s5 = smov 64   ;;  %s1687_s6 = smov 32  }
  0x34   : > { %v1811_v2 = vld [vmem:[%s164_s27 + $0x18] sm:$0xff]  ;;  %v202_v3 = vmul.f32 %v1807_v0, %v1807_v0  ;;  %v200_v4 = vmul.f32 %v1809_v1, %v1809_v1  ;;  %v1819_v6 = vld [vmem:[%s164_s27 + $0x8] sm:$0xff]  ;;  %v1825_v9 = vld [vmem:[%s164_s27 + $0x20] sm:$0xff]  ;;  %s1688_s7 = smov 96   ;;  %s1690_s8 = smov 16   ;;  %vm450_vm1 = vcmask 261120  }
  0x35   : > { %v203_v5 = vmul.f32 %v1811_v2, %v1811_v2  ;;  %v201_v7 = vmul.f32 %v1819_v6, %v1819_v6  ;;  %v1823_v8 = vld [vmem:[%s164_s27 + $0x28] sm:$0xff]  ;;  %v204_v15 = vmul.f32 %v1825_v9, %v1825_v9  ;;  %v1835_v16 = vld [vmem:[%s164_s27 + $0x38] sm:$0xff]  ;;  %v1837_v17 = vld [vmem:[%s164_s27 + $0x30] sm:$0xff]  ;;  %v1847_v25 = vshrl.u32 %v262_v24, 7  ;;  %s1691_s9 = smov 48   ;;  %s1692_s10 = smov 80  }
  0x36   : > { %v215_v10 = vsel %vm208_vm0, %v202_v3, 0.0  ;;  %v209_v11 = vsel %vm208_vm0, %v200_v4, 0.0  ;;  %v205_v14 = vmul.f32 %v1823_v8, %v1823_v8  ;;  %v207_v20 = vmul.f32 %v1835_v16, %v1835_v16  ;;  %v469_v27 = vld [vmem:[%s2633_s1] sm:$0xff]  ;;  %v470_v30 = vld [vmem:[%s2633_s1 + $0x8] sm:$0xff]  ;;  %v1872_v45 = vld [vmem:[%s2633_s1 + $0x10] sm:$0xf] }
  0x37   : > { %216 = vadd.xlane.f32.xlu1 %v215_v10  ;;  %210 = vadd.xlane.f32.xlu0 %v209_v11  ;;  %v218_v12 = vsel %vm208_vm0, %v203_v5, 0.0  ;;  %v212_v13 = vsel %vm208_vm0, %v201_v7, 0.0  ;;  %v221_v19 = vsel %vm208_vm0, %v204_v15, 0.0  ;;  %v206_v21 = vmul.f32 %v1837_v17, %v1837_v17  ;;  %s1693_s11 = smov 112   ;;  %s1999_s12 = sld [smem:[#allocation2]] }
  0x38   : > { %v224_v18 = vsel %vm208_vm0, %v205_v14, 0.0  ;;  %v230_v22 = vsel %vm208_vm0, %v207_v20, 0.0  ;;  %v481_v26 = vsub.s32 1, %v1847_v25  ;;  %v474_v29 = vsub.s32 0, %v1847_v25  ;;  %p187_p7 = scmp.lt.s32.totalorder %s1736_s2, 1 }
  0x39   : > { %v227_v23 = vsel %vm208_vm0, %v206_v21, 0.0  ;;  %v1858_v32 = vsub.s32 2, %v1847_v25  ;;  %v1862_v35 = vsub.s32 3, %v1847_v25  ;;  %v502_v38 = vsub.s32 4, %v1847_v25 }
  0x3a   : > { %v482_v28 = vrot.slane %v469_v27, %v481_v26  ;;  %v538_v31 = vrot.slane %v470_v30, %v481_v26  ;;  %v475_v33 = vrot.slane %v469_v27, %v474_v29  ;;  %v531_v36 = vrot.slane %v470_v30, %v474_v29  ;;  %s2699_s2 = smov (!%p187_p7, %s1736_s2), 1 }
  0x3b   : > { %219 = vadd.xlane.f32.xlu1 %v218_v12  ;;  %213 = vadd.xlane.f32.xlu0 %v212_v13  ;;  %v545_v34 = vrot.slane %v470_v30, %v1858_v32  ;;  %v552_v37 = vrot.slane %v470_v30, %v1862_v35  ;;  %v489_v39 = vrot.slane %v469_v27, %v1858_v32  ;;  %v509_v41 = vsub.s32 5, %v1847_v25  ;;  %s1467_s13 = smul.u32 48, %s2699_s2 }
  0x3c   : > { %v559_v40 = vrot.slane %v470_v30, %v502_v38  ;;  %v496_v42 = vrot.slane %v469_v27, %v1862_v35  ;;  %v503_v44 = vrot.slane %v469_v27, %v502_v38  ;;  %v594_v46 = vrot.slane %v1872_v45, %v481_v26 }
  0x3d   : > { %v566_v43 = vrot.slane %v470_v30, %v509_v41  ;;  %v516_v47 = vsub.s32 6, %v1847_v25  ;;  %v510_v48 = vrot.slane %v469_v27, %v509_v41  ;;  %v587_v50 = vrot.slane %v1872_v45, %v474_v29  ;;  %s2309_s19 = scalar_lea.vmem %s2635_s3, %s1467_s13 }
  0x3e   : > { %v601_v52 = vrot.slane %v1872_v45, %v1858_v32  ;;  %v523_v53 = vsub.s32 7, %v1847_v25  ;;  %v608_v56 = vrot.slane %v1872_v45, %v1862_v35  ;;  %v1684_v15 = vmov 1983009808  }
  0x3f   : > { %225 = vadd.xlane.f32.xlu1 %v224_v18  ;;  %222 = vadd.xlane.f32.xlu0 %v221_v19  ;;  %v573_v49 = vrot.slane %v470_v30, %v516_v47  ;;  %v517_v51 = vrot.slane %v469_v27, %v516_v47  ;;  %v260_v18 = vunpack.c.l.s4 %v1684_v15  ;;  %v1685_v24 = vmov 1934713408  }
  0x40   : > { %v1880_v54 = vrot.slane %v470_v30, %v523_v53  ;;  %v1882_v55 = vrot.slane %v469_v27, %v523_v53  ;;  %v292_v26 = vunpack.c.l.s4 %v1685_v24  ;;  %vm452_vm2 = vcmask 392192  }
  0x41   : > { %vm454_vm3 = vcmask 523264   ;;  %vm456_vm4 = vcmask 654336   ;;  %vm458_vm5 = vcmask 785408   ;;  %vm460_vm6 = vcmask 916480  }
  0x42   : > { %vm2636_vm7 = vcmask 1043456  }
  0x43   : > { %231 = vadd.xlane.f32.xlu1 %v230_v22  ;;  %228 = vadd.xlane.f32.xlu0 %v227_v23  ;;  %v261_v22 = vunpack.c.0.s8 %v260_v18 }
  0x54   : > { %484 = vbcast.lane.b32.xlu1 %v482_v28, 256 }
  0x58   : > { %540 = vbcast.lane.b32.xlu1 %v538_v31, 256 }
  0x59   : > { %477 = vbcast.lane.b32.xlu0 %v475_v33, 256 }
  0x5c   : > { %547 = vbcast.lane.b32.xlu1 %v545_v34, 256  ;;  %v264_v34 = vsub.s32 %v261_v22, %v1847_v25 }
  0x5d   : > { %533 = vbcast.lane.b32.xlu0 %v531_v36, 256 }
  0x60   : > { %554 = vbcast.lane.b32.xlu1 %v552_v37, 256  ;;  %v293_v37 = vunpack.c.0.s8 %v292_v26 }
  0x61   : > { %491 = vbcast.lane.b32.xlu0 %v489_v39, 256 }
  0x62   : > { %v296_v47 = vsub.s32 %v293_v37, %v1847_v25 }
  0x64   : > { %561 = vbcast.lane.b32.xlu1 %v559_v40, 256 }
  0x65   : > { %498 = vbcast.lane.b32.xlu0 %v496_v42, 256 }
  0x68   : > { %568 = vbcast.lane.b32.xlu1 %v566_v43, 256 }
  0x69   : > { %505 = vbcast.lane.b32.xlu0 %v503_v44, 256 }
  0x6c   : > { %596 = vbcast.lane.b32.xlu1 %v594_v46, 256 }
  0x6d   : > { %512 = vbcast.lane.b32.xlu0 %v510_v48, 256 }
  0x70   : > { %575 = vbcast.lane.b32.xlu1 %v573_v49, 256 }
  0x71   : > { %589 = vbcast.lane.b32.xlu0 %v587_v50, 256 }
  0x75   : > { %519 = vbcast.lane.b32.xlu0 %v517_v51, 256 }
  0xc4   : > { %v217_v57 = vpop.xlane.xlu1 %216  ;;  %v211_v58 = vpop.xlane.xlu0 %210 }
  0xc5   : > { %v233_v61 = vmax.f32 %v211_v58, 1e-24  ;;  %v235_v10 = vmax.f32 %v217_v57, 1e-24 }
  0xc7   : > { %1519 = vrsqrt.f32 %v233_v61 }
  0xc8   : > { %v220_v59 = vpop.xlane.xlu1 %219  ;;  %v214_v60 = vpop.xlane.xlu0 %213 }
  0xc9   : > { %v236_v62 = vmax.f32 %v220_v59, 1e-24  ;;  %v234_v4 = vmax.f32 %v214_v60, 1e-24 }
  0xcb   : > { %1521 = vrsqrt.f32 %v236_v62 }
  0xcc   : > { %v226_v63 = vpop.xlane.xlu1 %225  ;;  %v223_v3 = vpop.xlane.xlu0 %222 }
  0xcd   : > { %v238_v5 = vmax.f32 %v226_v63, 1e-24  ;;  %v237_v7 = vmax.f32 %v223_v3, 1e-24 }
  0xcf   : > { %1523 = vrsqrt.f32 %v238_v5 }
  0xd0   : > { %1525 = vrsqrt.f32 %v237_v7  ;;  %v232_v11 = vpop.xlane.xlu1 %231  ;;  %v229_v12 = vpop.xlane.xlu0 %228 }
  0xd1   : > { %1527 = vrsqrt.f32 %v234_v4  ;;  %v240_v13 = vmax.f32 %v232_v11, 1e-24  ;;  %v239_v14 = vmax.f32 %v229_v12, 1e-24  ;;  %v1520_v19 = vpop.eup %1519 }
  0xd2   : > { %1529 = vrsqrt.f32 %v235_v10  ;;  %v249_v33 = vmul.f32 %v1520_v19, %v1809_v1  ;;  %v1689_v10 = vmov 0.0  }
  0xd3   : > { %1531 = vrsqrt.f32 %v240_v13 }
  0xd4   : > { %1533 = vrsqrt.f32 %v239_v14  ;;  %v1904_v26 = vpop.permute.xlu1 %484 }
  0xd5   : > { %v1522_v20 = vpop.eup %1521 }
  0xd6   : > { %v252_v39 = vmul.f32 %v1522_v20, %v1811_v2 }
  0xd9   : > { %v1524_v21 = vpop.eup %1523 }
  0xda   : > { %v1526_v23 = vpop.eup %1525  ;;  %v254_v30 = vmul.f32 %v1524_v21, %v1823_v8 }
  0xdb   : > { %v1528_v27 = vpop.eup %1527  ;;  %v253_v28 = vmul.f32 %v1526_v23, %v1825_v9 }
  0xdc   : > { %v1530_v29 = vpop.eup %1529  ;;  %v250_v38 = vmul.f32 %v1528_v27, %v1819_v6  ;;  %v1906_v27 = vpop.permute.xlu0 %477 }
  0xdd   : > { %v1532_v31 = vpop.eup %1531  ;;  %v251_v41 = vmul.f32 %v1530_v29, %v1807_v0  ;;  %v258_v42 = vcombine.high %v249_v33, %v253_v28  ;;  %v257_v43 = vcombine.low %v249_v33, %v253_v28  ;;  %v541_v28 = vpop.permute.xlu1 %540 }
  0xde   : > { %v1534_v36 = vpop.eup %1533  ;;  %v256_v40 = vmul.f32 %v1532_v31, %v1835_v16  ;;  %v325_v8 = vcombine.low %v250_v38, %v254_v30  ;;  %v326_v0 = vcombine.high %v250_v38, %v254_v30 }
  0xdf   : > { %v255_v9 = vmul.f32 %v1534_v36, %v1837_v17  ;;  %v272_v50 = vrot.slane %v258_v42, %v264_v34  ;;  %v265_v51 = vrot.slane %v257_v43, %v264_v34 }
  0xe0   : > { %v341_v44 = vcombine.low %v252_v39, %v256_v40  ;;  %v342_v49 = vcombine.high %v252_v39, %v256_v40  ;;  %v333_v53 = vrot.slane %v325_v8, %v264_v34  ;;  %v340_v25 = vrot.slane %v326_v0, %v264_v34  ;;  %v534_v29 = vpop.permute.xlu0 %533 }
  0xe1   : > { %v274_v46 = vcombine.high %v251_v41, %v255_v9  ;;  %v273_v1 = vcombine.low %v251_v41, %v255_v9  ;;  %v1908_v30 = vpop.permute.xlu1 %547 }
  0xe2   : > { %v349_v48 = vrot.slane %v341_v44, %v264_v34  ;;  %v356_v17 = vrot.slane %v342_v49, %v264_v34 }
  0xe3   : > { %v288_v6 = vrot.slane %v274_v46, %v264_v34  ;;  %v281_v2 = vrot.slane %v273_v1, %v264_v34 }
  0xe4   : > { %v358_v58 = vcombine.high %v333_v53, %v349_v48  ;;  %v373_v4 = vcombine.low %v340_v25, %v356_v17  ;;  %v374_v12 = vcombine.high %v340_v25, %v356_v17  ;;  %v357_v13 = vcombine.low %v333_v53, %v349_v48  ;;  %v1910_v32 = vpop.permute.xlu0 %491 }
  0xe5   : > { %v305_v16 = vcombine.low %v272_v50, %v288_v6  ;;  %v290_v57 = vcombine.high %v265_v51, %v281_v2  ;;  %v306_v61 = vcombine.high %v272_v50, %v288_v6  ;;  %v289_v62 = vcombine.low %v265_v51, %v281_v2 }
  0xe6   : > { %v372_v3 = vrot.slane %v358_v58, %v296_v47  ;;  %v381_v7 = vrot.slane %v373_v4, %v296_v47  ;;  %v388_v14 = vrot.slane %v374_v12, %v296_v47  ;;  %v365_v18 = vrot.slane %v357_v13, %v296_v47 }
  0xe7   : > { %v313_v59 = vrot.slane %v305_v16, %v296_v47  ;;  %v304_v60 = vrot.slane %v290_v57, %v296_v47  ;;  %v320_v63 = vrot.slane %v306_v61, %v296_v47  ;;  %v297_v5 = vrot.slane %v289_v62, %v296_v47 }
  0xe8   : > { %v389_v19 = vcombine.high %v365_v18, %v1689_v10  ;;  %v390_v21 = vcombine.high %v372_v3, %v1689_v10  ;;  %v391_v23 = vcombine.high %v381_v7, %v1689_v10  ;;  %v392_v24 = vcombine.high %v388_v14, %v1689_v10  ;;  %v1914_v31 = vpop.permute.xlu0 %498 }
  0xe9   : > { %406 = vrot.lane.b32.xlu0 %v313_v59, %s1686_s5  ;;  %398 = vrot.lane.b32.xlu1 %v304_v60, %s1687_s6  ;;  %v321_v11 = vcombine.high %v297_v5, %v1689_v10  ;;  %v322_v15 = vcombine.high %v304_v60, %v1689_v10  ;;  %v323_v20 = vcombine.high %v313_v59, %v1689_v10 }
  0xea   : > { %v324_v22 = vcombine.high %v320_v63, %v1689_v10 }
  0xed   : > { %414 = vrot.lane.b32.xlu0 %v320_v63, %s1688_s7  ;;  %426 = vrot.lane.b32.xlu1 %v372_v3, %s1687_s6 }
  0xf1   : > { %434 = vrot.lane.b32.xlu1 %v381_v7, %s1686_s5  ;;  %394 = vrot.lane.b32.xlu0 %v321_v11, %s1690_s8 }
  0xf5   : > { %442 = vrot.lane.b32.xlu1 %v388_v14, %s1688_s7  ;;  %402 = vrot.lane.b32.xlu0 %v322_v15, %s1691_s9 }
  0xf9   : > { %422 = vrot.lane.b32.xlu1 %v389_v19, %s1690_s8  ;;  %410 = vrot.lane.b32.xlu0 %v323_v20, %s1692_s10 }
  0xfd   : > { %430 = vrot.lane.b32.xlu1 %v390_v21, %s1691_s9  ;;  %418 = vrot.lane.b32.xlu0 %v324_v22, %s1693_s11 }
 0x101   : > { %438 = vrot.lane.b32.xlu1 %v391_v23, %s1692_s10  ;;  %603 = vbcast.lane.b32.xlu0 %v601_v52, 256  ;;  %v1912_v52 = vpop.permute.xlu1 %554 }
 0x105   : > { %446 = vrot.lane.b32.xlu1 %v392_v24, %s1693_s11  ;;  %582 = vbcast.lane.b32.xlu0 %v1880_v54, 256  ;;  %v1916_v54 = vpop.permute.xlu1 %561 }
 0x109   : > { %526 = vbcast.lane.b32.xlu1 %v1882_v55, 256  ;;  %v1918_v55 = vpop.permute.xlu0 %505  ;;  %v1920_v35 = vpop.permute.xlu1 %568 }
 0x10d   : > { %610 = vbcast.lane.b32.xlu1 %v608_v56, 256  ;;  %v1922_v45 = vpop.permute.xlu0 %512  ;;  %v1924_v56 = vpop.permute.xlu1 %596 }
 0x111   : > { %v1926_v33 = vpop.permute.xlu0 %589  ;;  %v1928_v34 = vpop.permute.xlu1 %575 }
 0x115   : > { %v1930_v36 = vpop.permute.xlu0 %519 }
 0x15b   : > { %v399_v37 = vpop.permute.xlu1 %398  ;;  %v407_v38 = vpop.permute.xlu0 %406 }
 0x15f   : > { %v427_v39 = vpop.permute.xlu1 %426  ;;  %v415_v40 = vpop.permute.xlu0 %414 }
 0x163   : > { %v435_v41 = vpop.permute.xlu1 %434  ;;  %v395_v9 = vpop.permute.xlu0 %394 }
 0x164   : > { %v449_v42 = vsel %vm208_vm0, %v297_v5, %v395_v9 }
 0x165   : > { %v451_v44 = vsel %vm450_vm1, %v449_v42, %v399_v37 }
 0x167   : > { %v443_v43 = vpop.permute.xlu1 %442  ;;  %v403_v8 = vpop.permute.xlu0 %402 }
 0x168   : > { %v453_v46 = vsel %vm452_vm2, %v451_v44, %v403_v8 }
 0x169   : > { %v455_v49 = vsel %vm454_vm3, %v453_v46, %v407_v38 }
 0x16b   : > { %v423_v1 = vpop.permute.xlu1 %422  ;;  %v411_v47 = vpop.permute.xlu0 %410 }
 0x16c   : > { %v462_v48 = vsel %vm208_vm0, %v365_v18, %v423_v1  ;;  %v457_v50 = vsel %vm456_vm4, %v455_v49, %v411_v47 }
 0x16d   : > { %v463_v6 = vsel %vm450_vm1, %v462_v48, %v427_v39  ;;  %v459_v16 = vsel %vm458_vm5, %v457_v50, %v415_v40 }
 0x16f   : > { %v431_v51 = vpop.permute.xlu1 %430  ;;  %v419_v2 = vpop.permute.xlu0 %418 }
 0x170   : > { %v464_v53 = vsel %vm452_vm2, %v463_v6, %v431_v51  ;;  %v1936_v57 = vsel %vm460_vm6, %v459_v16, %v419_v2 }
 0x171   : > { %v465_v0 = vsel %vm454_vm3, %v464_v53, %v435_v41  ;;  %v628_v59 = vsub.f32 %v1936_v57, %v534_v29  ;;  %v644_v62 = vsub.f32 %v1936_v57, %v1926_v33  ;;  %v630_v3 = vsub.f32 %v1936_v57, %v541_v28 }
 0x172   : > { %v646_v5 = vsub.f32 %v1936_v57, %v1924_v56  ;;  %v632_v13 = vsub.f32 %v1936_v57, %v1908_v30  ;;  %v634_v39 = vsub.f32 %v1936_v57, %v1912_v52  ;;  %v636_v46 = vsub.f32 %v1936_v57, %v1916_v54 }
 0x173   : > { %v439_v58 = vpop.permute.xlu1 %438  ;;  %v668_v4 = vmul.f32 %v628_v59, %v628_v59  ;;  %v1947_v7 = vpop.permute.xlu0 %603  ;;  %v684_v11 = vmul.f32 %v644_v62, %v644_v62  ;;  %v670_v14 = vmul.f32 %v630_v3, %v630_v3  ;;  %v638_v48 = vsub.f32 %v1936_v57, %v1920_v35 }
 0x174   : > { %v466_v17 = vsel %vm456_vm4, %v465_v0, %v439_v58  ;;  %v686_v18 = vmul.f32 %v646_v5, %v646_v5  ;;  %v648_v19 = vsub.f32 %v1936_v57, %v1947_v7  ;;  %v674_v49 = vmul.f32 %v634_v39, %v634_v39 }
 0x175   : > { %v467_v60 = vsel %vm458_vm5, %v466_v17, %v443_v43  ;;  %v805_v15 = vsel %vm2636_vm7, %v668_v4, 0.0  ;;  %v917_v21 = vsel %vm2636_vm7, %v684_v11, 0.0  ;;  %v678_v62 = vmul.f32 %v638_v48, %v638_v48 }
 0x176   : > { %v806_v24 = vrot.slane %v805_v15, 4  ;;  %v931_v37 = vsel %vm2636_vm7, %v686_v18, 0.0  ;;  %v688_v38 = vmul.f32 %v648_v19, %v648_v19  ;;  %v918_v41 = vrot.slane %v917_v21, 4 }
 0x177   : > { %v447_v61 = vpop.permute.xlu1 %446  ;;  %v932_v44 = vrot.slane %v931_v37, 4  ;;  %v847_v3 = vsel %vm2636_vm7, %v674_v49, 0.0  ;;  %v875_v49 = vsel %vm2636_vm7, %v678_v62, 0.0  ;;  %vm2642_vm5 = vcmask 1041409  }
 0x178   : > { %v1941_v25 = vsel %vm460_vm6, %v467_v60, %v447_v61  ;;  %v807_v43 = vadd.f32 %v806_v24, %v805_v15  ;;  %v945_v47 = vsel %vm2636_vm7, %v688_v38, 0.0  ;;  %v919_v6 = vadd.f32 %v918_v41, %v917_v21 }
 0x179   : > { %v629_v63 = vsub.f32 %v1941_v25, %v534_v29  ;;  %v631_v12 = vsub.f32 %v1941_v25, %v541_v28  ;;  %v633_v22 = vsub.f32 %v1941_v25, %v1908_v30  ;;  %v672_v28 = vmul.f32 %v632_v13, %v632_v13 }
 0x17a   : > { %v819_v29 = vsel %vm2636_vm7, %v670_v14, 0.0  ;;  %v635_v9 = vsub.f32 %v1941_v25, %v1912_v52  ;;  %v637_v52 = vsub.f32 %v1941_v25, %v1916_v54  ;;  %v808_v53 = vrot.slane %v807_v43, 2 }
 0x17b   : > { %v669_v10 = vmul.f32 %v629_v63, %v629_v63  ;;  %v671_v23 = vmul.f32 %v631_v12, %v631_v12  ;;  %v673_v42 = vmul.f32 %v633_v22, %v633_v22  ;;  %v820_v8 = vrot.slane %v819_v29, 4 }
 0x17c   : > { %v833_v1 = vsel %vm2636_vm7, %v672_v28, 0.0  ;;  %v675_v51 = vmul.f32 %v635_v9, %v635_v9  ;;  %v933_v17 = vadd.f32 %v932_v44, %v931_v37  ;;  %v946_v59 = vrot.slane %v945_v47, 4 }
 0x17d   : > { %v812_v20 = vsel %vm2636_vm7, %v669_v10, 0.0  ;;  %v826_v30 = vsel %vm2636_vm7, %v671_v23, 0.0  ;;  %v821_v16 = vadd.f32 %v820_v8, %v819_v29  ;;  %v834_v0 = vrot.slane %v833_v1, 4 }
 0x17e   : > { %v813_v40 = vrot.slane %v812_v20, 4  ;;  %v827_v2 = vrot.slane %v826_v30, 4  ;;  %v840_v58 = vsel %vm2636_vm7, %v673_v42, 0.0  ;;  %v640_v60 = vsub.f32 %v1936_v57, %v1928_v34 }
 0x17f   : > { %v676_v61 = vmul.f32 %v636_v46, %v636_v46  ;;  %v920_v4 = vrot.slane %v919_v6, 2  ;;  %v841_v54 = vrot.slane %v840_v58, 4  ;;  %v854_v10 = vsel %vm2636_vm7, %v675_v51, 0.0 }
 0x180   : > { %v814_v50 = vadd.f32 %v813_v40, %v812_v20  ;;  %v828_v5 = vadd.f32 %v827_v2, %v826_v30  ;;  %v677_v11 = vmul.f32 %v637_v52, %v637_v52  ;;  %v809_v12 = vadd.f32 %v808_v53, %v807_v43 }
 0x181   : > { %v822_v13 = vrot.slane %v821_v16, 2  ;;  %v835_v14 = vadd.f32 %v834_v0, %v833_v1  ;;  %v934_v15 = vrot.slane %v933_v17, 2  ;;  %v1979_v18 = vadd.f32 %v946_v59, %v945_v47 }
 0x182   : > { %v815_v63 = vrot.slane %v814_v50, 2  ;;  %v639_v19 = vsub.f32 %v1941_v25, %v1920_v35  ;;  %v848_v20 = vrot.slane %v847_v3, 4  ;;  %v641_v21 = vsub.f32 %v1941_v25, %v1928_v34 }
 0x183   : > { %v680_v22 = vmul.f32 %v640_v60, %v640_v60  ;;  %v855_v24 = vrot.slane %v854_v10, 4  ;;  %v1985_v28 = vadd.f32 %v920_v4, %v919_v6  ;;  %v829_v29 = vrot.slane %v828_v5, 2 }
 0x184   : > { %v816_v23 = vadd.f32 %v815_v63, %v814_v50  ;;  %v842_v37 = vadd.f32 %v841_v54, %v840_v58  ;;  %v861_v38 = vsel %vm2636_vm7, %v676_v61, 0.0  ;;  %v810_v39 = vrot.slane %v809_v12, 1 }
 0x185   : > { %v823_v40 = vadd.f32 %v822_v13, %v821_v16  ;;  %v836_v41 = vrot.slane %v835_v14, 2  ;;  %v868_v9 = vsel %vm2636_vm7, %v677_v11, 0.0  ;;  %v1989_v42 = vadd.f32 %v934_v15, %v933_v17 }
 0x186   : > { %v948_v35 = vrot.slane %v1979_v18, 2  ;;  %v679_v43 = vmul.f32 %v639_v19, %v639_v19  ;;  %v849_v34 = vadd.f32 %v848_v20, %v847_v3  ;;  %v681_v8 = vmul.f32 %v641_v21, %v641_v21 }
 0x187   : > { %v817_v30 = vrot.slane %v816_v23, 1  ;;  %v856_v44 = vadd.f32 %v855_v24, %v854_v10  ;;  %v862_v46 = vrot.slane %v861_v38, 4  ;;  %v830_v1 = vadd.f32 %v829_v29, %v828_v5 }
 0x188   : > { %v843_v47 = vrot.slane %v842_v37, 2  ;;  %v869_v48 = vrot.slane %v868_v9, 4  ;;  %v1993_v50 = vadd.f32 %v810_v39, %v809_v12  ;;  %v824_v6 = vrot.slane %v823_v40, 1 }
 0x189   : > { %v837_v52 = vadd.f32 %v836_v41, %v835_v14  ;;  %v863_v51 = vadd.f32 %v862_v46, %v861_v38  ;;  %v850_v2 = vrot.slane %v849_v34, 2  ;;  %v876_v16 = vrot.slane %v875_v49, 4 }
 0x18a   : > { %v870_v53 = vadd.f32 %v869_v48, %v868_v9  ;;  %v882_v0 = vsel %vm2636_vm7, %v679_v43, 0.0  ;;  %v1996_v58 = vadd.f32 %v817_v30, %v816_v23  ;;  %v857_v17 = vrot.slane %v856_v44, 2 }
 0x18b   : > { %v883_v59 = vrot.slane %v882_v0, 4  ;;  %v889_v60 = vsel %vm2636_vm7, %v680_v22, 0.0  ;;  %v844_v61 = vadd.f32 %v843_v47, %v842_v37  ;;  %v864_v62 = vrot.slane %v863_v51, 2 }
 0x18c   : > { %v877_v63 = vadd.f32 %v876_v16, %v875_v49  ;;  %v890_v3 = vrot.slane %v889_v60, 4  ;;  %v871_v4 = vrot.slane %v870_v53, 2  ;;  %v896_v54 = vsel %vm2636_vm7, %v681_v8, 0.0 }
 0x18d   : > { %v884_v5 = vadd.f32 %v883_v59, %v882_v0  ;;  %1535 = vrsqrt.f32 %v1993_v50  ;;  %v831_v10 = vrot.slane %v830_v1, 1  ;;  %v851_v11 = vadd.f32 %v850_v2, %v849_v34 }
 0x18e   : > { %v891_v12 = vadd.f32 %v890_v3, %v889_v60  ;;  %v897_v13 = vrot.slane %v896_v54, 4  ;;  %v838_v14 = vrot.slane %v837_v52, 1  ;;  %v858_v15 = vadd.f32 %v857_v17, %v856_v44 }
 0x18f   : > { %v878_v19 = vrot.slane %v877_v63, 2  ;;  %v885_v20 = vrot.slane %v884_v5, 2  ;;  %v2003_v21 = vadd.f32 %v824_v6, %v823_v40  ;;  %v865_v22 = vadd.f32 %v864_v62, %v863_v51 }
 0x190   : > { %v892_v23 = vrot.slane %v891_v12, 2  ;;  %v898_v24 = vadd.f32 %v897_v13, %v896_v54  ;;  %v922_v29 = vrot.slane %v1985_v28, 1  ;;  %v845_v37 = vrot.slane %v844_v61, 1 }
 0x191   : > { %v872_v38 = vadd.f32 %v871_v4, %v870_v53  ;;  %1537 = vrsqrt.f32 %v1996_v58  ;;  %v936_v39 = vrot.slane %v1989_v42, 1  ;;  %v2008_v41 = vadd.f32 %v831_v10, %v830_v1 }
 0x192   : > { %v852_v9 = vrot.slane %v851_v11, 1  ;;  %v899_v43 = vrot.slane %v898_v24, 2  ;;  %v2010_v34 = vadd.f32 %v838_v14, %v837_v52  ;;  %v859_v40 = vrot.slane %v858_v15, 1 }
 0x193   : > { %v879_v8 = vadd.f32 %v878_v19, %v877_v63  ;;  %v886_v30 = vadd.f32 %v885_v20, %v884_v5  ;;  %v2013_v44 = vstv %s1999_s12  ;;  %v866_v46 = vrot.slane %v865_v22, 1 }
 0x194   : > { %v893_v47 = vadd.f32 %v892_v23, %v891_v12  ;;  %1539 = vrsqrt.f32 %v2003_v21  ;;  %v2017_v48 = vadd.f32 %v922_v29, %v1985_v28  ;;  %v2020_v49 = vadd.f32 %v948_v35, %v1979_v18 }
 0x195   : > { %v2022_v1 = vadd.f32 %v845_v37, %v844_v61  ;;  %v873_v6 = vrot.slane %v872_v38, 1  ;;  %v2025_v52 = vadd.f32 %v936_v39, %v1989_v42  ;;  %v2027_v51 = vadd.f32 %v852_v9, %v851_v11 }
 0x196   : > { %v900_v2 = vadd.f32 %v899_v43, %v898_v24  ;;  %1541 = vrsqrt.f32 %v2008_v41  ;;  %v2030_v16 = vadd.f32 %v859_v40, %v858_v15  ;;  %v880_v0 = vrot.slane %v879_v8, 1 }
 0x197   : > { %v1536_v53 = vpop.eup %1535  ;;  %v887_v28 = vrot.slane %v886_v30, 1  ;;  %1543 = vrsqrt.f32 %v2010_v34  ;;  %v2033_v18 = vadd.f32 %v866_v46, %v865_v22  ;;  %v894_v35 = vrot.slane %v893_v47, 1 }
 0x198   : > { %vm1087_vm8 = vcmp.eq.f32.partialorder %v1993_v50, inf  ;;  %vm1089_vm9 = vcmp.eq.f32.partialorder %v1993_v50, 0.0  ;;  %v2037_v42 = vadd.f32 %v873_v6, %v872_v38  ;;  %v1090_v17 = vand.u32 2147483648, %v1993_v50 }
 0x199   : > { %vm1094_vm10 = vcmp.eq.f32.partialorder %v1996_v58, inf  ;;  %1545 = vrsqrt.f32 %v2022_v1  ;;  %v901_v59 = vrot.slane %v900_v2, 1  ;;  %v1086_v60 = vmul.f32 %v1536_v53, %v1993_v50 }
 0x19a   : > { %v1097_v61 = vand.u32 2147483648, %v1996_v58  ;;  %1547 = vrsqrt.f32 %v2027_v51  ;;  %v2045_v63 = vadd.f32 %v880_v0, %v879_v8  ;;  %v2047_v3 = vadd.f32 %v887_v28, %v886_v30 }
 0x19b   : > { %v1538_v62 = vpop.eup %1537  ;;  %vm1101_vm11 = vcmp.eq.f32.partialorder %v2003_v21, inf  ;;  %1549 = vrsqrt.f32 %v2030_v16  ;;  %v2051_v4 = vadd.f32 %v894_v35, %v893_v47  ;;  %vm1096_vm12 = vcmp.eq.f32.partialorder %v1996_v58, 0.0 }
 0x19c   : > { %vm1103_vm13 = vcmp.eq.f32.partialorder %v2003_v21, 0.0  ;;  %v1104_v5 = vand.u32 2147483648, %v2003_v21  ;;  %vm1108_vm14 = vcmp.eq.f32.partialorder %v2008_v41, inf  ;;  %1551 = vrsqrt.f32 %v2033_v18 }
 0x19d   : > { %vm1110_vm15 = vcmp.eq.f32.partialorder %v2008_v41, 0.0  ;;  %v1111_v54 = vand.u32 2147483648, %v2008_v41  ;;  %vm1115_vm0 = vcmp.eq.f32.partialorder %v2010_v34, inf  ;;  %1553 = vrsqrt.f32 %v2037_v42 }
 0x19e   : > { %v1540_v10 = vpop.eup %1539  ;;  %v2062_v11 = vadd.f32 %v901_v59, %v900_v2  ;;  %v1088_v12 = vsel %vm1087_vm8, %v1993_v50, %v1086_v60  ;;  %v1093_v13 = vmul.f32 %v1538_v62, %v1996_v58  ;;  %vm1117_vm1 = vcmp.eq.f32.partialorder %v2010_v34, 0.0 }
 0x19f   : > { %v1100_v14 = vmul.f32 %v1540_v10, %v2003_v21  ;;  %v1118_v15 = vand.u32 2147483648, %v2010_v34  ;;  %vm1122_vm2 = vcmp.eq.f32.partialorder %v2022_v1, inf  ;;  %1555 = vrsqrt.f32 %v2045_v63 }
 0x1a0   : > { %v1542_v19 = vpop.eup %1541  ;;  %vm1124_vm3 = vcmp.eq.f32.partialorder %v2022_v1, 0.0  ;;  %v1125_v20 = vand.u32 2147483648, %v2022_v1  ;;  %vm1129_vm4 = vcmp.eq.f32.partialorder %v2027_v51, inf  ;;  %1557 = vrsqrt.f32 %v2047_v3 }
 0x1a1   : > { %v1544_v22 = vpop.eup %1543  ;;  %v1091_v23 = vsel %vm1089_vm9, %v1090_v17, %v1088_v12  ;;  %v1107_v24 = vmul.f32 %v1542_v19, %v2008_v41  ;;  %v1132_v29 = vand.u32 2147483648, %v2027_v51  ;;  %vm1136_vm6 = vcmp.eq.f32.partialorder %v2030_v16, inf }
 0x1a2   : > { %v1095_v37 = vsel %vm1094_vm10, %v1996_v58, %v1093_v13  ;;  %v1102_v38 = vsel %vm1101_vm11, %v2003_v21, %v1100_v14  ;;  %v1114_v39 = vmul.f32 %v1544_v22, %v2010_v34  ;;  %1559 = vrsqrt.f32 %v2051_v4 }
 0x1a3   : > { %v1546_v50 = vpop.eup %1545  ;;  %vm2641_vm8 = vcmask 1042434   ;;  %v1109_v9 = vsel %vm1108_vm14, %v2008_v41, %v1107_v24  ;;  %vm1131_vm9 = vcmp.eq.f32.partialorder %v2027_v51, 0.0  ;;  %v1139_v43 = vand.u32 2147483648, %v2030_v16 }
 0x1a4   : > { %vm1143_vm10 = vcmp.eq.f32.partialorder %v2033_v18, inf  ;;  %1561 = vrsqrt.f32 %v2062_v11  ;;  %v1548_v40 = vpop.eup %1547  ;;  %v1116_v8 = vsel %vm1115_vm0, %v2010_v34, %v1114_v39  ;;  %v1121_v30 = vmul.f32 %v1546_v50, %v2022_v1 }
 0x1a5   : > { %vm1138_vm11 = vcmp.eq.f32.partialorder %v2030_v16, 0.0  ;;  %vm1145_vm7 = vcmp.eq.f32.partialorder %v2033_v18, 0.0  ;;  %v1146_v46 = vand.u32 2147483648, %v2033_v18  ;;  %vm1150_vm14 = vcmp.eq.f32.partialorder %v2037_v42, inf  ;;  %v1550_v47 = vpop.eup %1549 }
 0x1a6   : > { %v1098_v6 = vsel %vm1096_vm12, %v1097_v61, %v1095_v37  ;;  %v1105_v2 = vsel %vm1103_vm13, %v1104_v5, %v1102_v38  ;;  %v1112_v53 = vsel %vm1110_vm15, %v1111_v54, %v1109_v9  ;;  %v1128_v0 = vmul.f32 %v1548_v40, %v2027_v51  ;;  %v1552_v28 = vpop.eup %1551 }
 0x1a7   : > { %v1123_v35 = vsel %vm1122_vm2, %v2022_v1, %v1121_v30  ;;  %v1135_v17 = vmul.f32 %v1550_v47, %v2030_v16  ;;  %v1153_v59 = vand.u32 2147483648, %v2037_v42  ;;  %vm1157_vm0 = vcmp.eq.f32.partialorder %v2045_v63, inf  ;;  %v1554_v58 = vpop.eup %1553 }
 0x1a8   : > { %vm2640_vm12 = vcmask 1043459   ;;  %v1119_v21 = vsel %vm1117_vm1, %v1118_v15, %v1116_v8  ;;  %v1142_v41 = vmul.f32 %v1552_v28, %v2033_v18  ;;  %vm1152_vm13 = vcmp.eq.f32.partialorder %v2037_v42, 0.0 }
 0x1a9   : > { %v1160_v60 = vand.u32 2147483648, %v2045_v63  ;;  %v1271_v61 = vmul.f32 %v2013_v44, %v1091_v23  ;;  %v1126_v62 = vsel %vm1124_vm3, %v1125_v20, %v1123_v35  ;;  %vm1159_vm15 = vcmp.eq.f32.partialorder %v2045_v63, 0.0  ;;  %v1556_v10 = vpop.eup %1555 }
 0x1aa   : > { %v1272_v5 = vmul.f32 %v2013_v44, %v1098_v6  ;;  %v1273_v54 = vmul.f32 %v2013_v44, %v1105_v2  ;;  %v1274_v34 = vmul.f32 %v2013_v44, %v1112_v53  ;;  %v1130_v12 = vsel %vm1129_vm4, %v2027_v51, %v1128_v0  ;;  %v1558_v1 = vpop.eup %1557 }
 0x1ab   : > { %v1149_v13 = vmul.f32 %v1554_v58, %v2037_v42  ;;  %vm1164_vm1 = vcmp.eq.f32.partialorder %v2047_v3, inf  ;;  %vm1166_vm2 = vcmp.eq.f32.partialorder %v2047_v3, 0.0  ;;  %v1137_v14 = vsel %vm1136_vm6, %v2030_v16, %v1135_v17 }
 0x1ac   : > { %v1144_v15 = vsel %vm1143_vm10, %v2033_v18, %v1142_v41  ;;  %v1156_v19 = vmul.f32 %v1556_v10, %v2045_v63  ;;  %v1275_v20 = vmul.f32 %v2013_v44, %v1119_v21  ;;  %v1163_v22 = vmul.f32 %v1558_v1, %v2047_v3  ;;  %v1560_v37 = vpop.eup %1559 }
 0x1ad   : > { %v1167_v23 = vand.u32 2147483648, %v2047_v3  ;;  %vm1171_vm4 = vcmp.eq.f32.partialorder %v2051_v4, inf  ;;  %v1276_v24 = vmul.f32 %v2013_v44, %v1126_v62  ;;  %v1133_v38 = vsel %vm1131_vm9, %v1132_v29, %v1130_v12 }
 0x1ae   : > { %vm1173_vm6 = vcmp.eq.f32.partialorder %v2051_v4, 0.0  ;;  %vm2639_vm3 = vcmask 1045509   ;;  %v1356_v39 = vsel %vm2642_vm5, %v1273_v54, %v1271_v61  ;;  %v1363_v50 = vsel %vm2642_vm5, %v1274_v34, %v1272_v5  ;;  %v1562_v9 = vpop.eup %1561 }
 0x1af   : > { %v1140_v40 = vsel %vm1138_vm11, %v1139_v43, %v1137_v14  ;;  %v1147_v8 = vsel %vm1145_vm7, %v1146_v46, %v1144_v15  ;;  %v1151_v30 = vsel %vm1150_vm14, %v2037_v42, %v1149_v13  ;;  %v1170_v51 = vmul.f32 %v1560_v37, %v2051_v4  ;;  %v583_v43 = vpop.permute.xlu0 %582 }
 0x1b0   : > { %v1158_v29 = vsel %vm1157_vm0, %v2045_v63, %v1156_v19  ;;  %v1174_v47 = vand.u32 2147483648, %v2051_v4  ;;  %vm1178_vm9 = vcmp.eq.f32.partialorder %v2062_v11, inf  ;;  %v1357_v16 = vsel %vm2641_vm8, %v1275_v20, %v1356_v39 }
 0x1b1   : > { %v1165_v18 = vsel %vm1164_vm1, %v2047_v3, %v1163_v22  ;;  %v1177_v46 = vmul.f32 %v1562_v9, %v2062_v11  ;;  %v1277_v6 = vmul.f32 %v2013_v44, %v1133_v38  ;;  %vm2638_vm7 = vcmask 1046534  }
 0x1b2   : > { %v1364_v2 = vsel %vm2641_vm8, %v1276_v24, %v1363_v50  ;;  %v1154_v53 = vsel %vm1152_vm13, %v1153_v59, %v1151_v30  ;;  %vm1180_vm10 = vcmp.eq.f32.partialorder %v2062_v11, 0.0  ;;  %v1278_v0 = vmul.f32 %v2013_v44, %v1140_v40 }
 0x1b3   : > { %v1279_v28 = vmul.f32 %v2013_v44, %v1147_v8  ;;  %v1161_v35 = vsel %vm1159_vm15, %v1160_v60, %v1158_v29  ;;  %v1172_v17 = vsel %vm1171_vm4, %v2051_v4, %v1170_v51  ;;  %v1358_v58 = vsel %vm2640_vm12, %v1277_v6, %v1357_v16 }
 0x1b4   : > { %v642_v21 = vsub.f32 %v1936_v57, %v583_v43  ;;  %v1168_v42 = vsel %vm1166_vm2, %v1167_v23, %v1165_v18  ;;  %v1365_v59 = vsel %vm2640_vm12, %v1278_v0, %v1364_v2  ;;  %v643_v41 = vsub.f32 %v1941_v25, %v583_v43 }
 0x1b5   : > { %v615_v61 = vsub.f32 %v1941_v25, %v1904_v26  ;;  %v1179_v63 = vsel %vm1178_vm9, %v2062_v11, %v1177_v46  ;;  %v1181_v60 = vand.u32 2147483648, %v2062_v11  ;;  %v1280_v62 = vmul.f32 %v2013_v44, %v1154_v53 }
 0x1b6   : > { %v682_v5 = vmul.f32 %v642_v21, %v642_v21  ;;  %v1175_v3 = vsel %vm1173_vm6, %v1174_v47, %v1172_v17  ;;  %vm2646_vm11 = vcmask 1044484   ;;  %v683_v34 = vmul.f32 %v643_v41, %v643_v41 }
 0x1b7   : > { %v1359_v54 = vsel %vm2646_vm11, %v1279_v28, %v1358_v58  ;;  %v655_v10 = vmul.f32 %v615_v61, %v615_v61  ;;  %v1281_v12 = vmul.f32 %v2013_v44, %v1161_v35  ;;  %v1282_v13 = vmul.f32 %v2013_v44, %v1168_v42  ;;  %vm2647_vm14 = vmmov %vm2646_vm11 }
 0x1b8   : > { %v1366_v1 = vsel %vm2647_vm14, %v1280_v62, %v1365_v59  ;;  %vm2648_vm0 = vcmask 1043456   ;;  %v1182_v15 = vsel %vm1180_vm10, %v1181_v60, %v1179_v63  ;;  %v1283_v22 = vmul.f32 %v2013_v44, %v1175_v3  ;;  %v527_v63 = vpop.permute.xlu1 %526 }
 0x1b9   : > { %v903_v14 = vsel %vm2648_vm0, %v682_v5, 0.0  ;;  %vm2649_vm13 = vmmov %vm2648_vm0  ;;  %v1360_v23 = vsel %vm2639_vm3, %v1281_v12, %v1359_v54  ;;  %v1367_v38 = vsel %vm2639_vm3, %v1282_v13, %v1366_v1  ;;  %v612_v50 = vsub.f32 %v1936_v57, %v1906_v27 }
 0x1ba   : > { %v904_v19 = vrot.slane %v903_v14, 4  ;;  %v910_v20 = vsel %vm2649_vm13, %v683_v34, 0.0  ;;  %vm2650_vm15 = vmmov %vm2648_vm0  ;;  %v613_v11 = vsub.f32 %v1941_v25, %v1906_v27  ;;  %1563 = vrsqrt.f32 %v2017_v48 }
 0x1bb   : > { %v714_v4 = vsel %vm2650_vm15, %v655_v10, 0.0  ;;  %v911_v24 = vrot.slane %v910_v20, 4  ;;  %v1284_v9 = vmul.f32 %v2013_v44, %v1182_v15  ;;  %1565 = vrsqrt.f32 %v2025_v52  ;;  %vm2651_vm1 = vmmov %vm2648_vm0 }
 0x1bc   : > { %v715_v37 = vrot.slane %v714_v4, 4  ;;  %v905_v39 = vadd.f32 %v904_v19, %v903_v14  ;;  %v950_v30 = vrot.slane %v2020_v49, 1  ;;  %v2219_v51 = vsel %vm2638_vm7, %v1283_v22, %v1360_v23  ;;  %vm2652_vm2 = vmmov %vm2648_vm0 }
 0x1bd   : > { %v912_v40 = vadd.f32 %v911_v24, %v910_v20  ;;  %v2222_v47 = vsel %vm2638_vm7, %v1284_v9, %v1367_v38  ;;  %v614_v27 = vsub.f32 %v1936_v57, %v1904_v26  ;;  %v616_v46 = vsub.f32 %v1936_v57, %v1910_v32  ;;  %vm2653_vm4 = vmmov %vm2648_vm0 }
 0x1be   : > { %v716_v8 = vadd.f32 %v715_v37, %v714_v4  ;;  %v906_v29 = vrot.slane %v905_v39, 2  ;;  %v652_v6 = vmul.f32 %v612_v50, %v612_v50  ;;  %v653_v2 = vmul.f32 %v613_v11, %v613_v11  ;;  %vm2654_vm6 = vmmov %vm2648_vm0 }
 0x1bf   : > { %v913_v16 = vrot.slane %v912_v40, 2  ;;  %v617_v28 = vsub.f32 %v1941_v25, %v1910_v32  ;;  %v618_v35 = vsub.f32 %v1936_v57, %v1914_v31  ;;  %v619_v58 = vsub.f32 %v1941_v25, %v1914_v31  ;;  %vm2655_vm9 = vmmov %vm2648_vm0 }
 0x1c0   : > { %v717_v43 = vrot.slane %v716_v8, 2  ;;  %v907_v18 = vadd.f32 %v906_v29, %v905_v39  ;;  %v620_v26 = vsub.f32 %v1936_v57, %v1918_v55  ;;  %v621_v21 = vsub.f32 %v1941_v25, %v1918_v55  ;;  %vm2656_vm10 = vmmov %vm2648_vm0 }
 0x1c1   : > { %v914_v53 = vadd.f32 %v913_v16, %v912_v40  ;;  %v622_v41 = vsub.f32 %v1936_v57, %v1922_v45  ;;  %v654_v61 = vmul.f32 %v614_v27, %v614_v27  ;;  %v656_v60 = vmul.f32 %v616_v46, %v616_v46  ;;  %vm2657_vm13 = vmmov %vm2651_vm1 }
 0x1c2   : > { %v718_v0 = vadd.f32 %v717_v43, %v716_v8  ;;  %v908_v17 = vrot.slane %v907_v18, 1  ;;  %v693_v62 = vsel %vm2651_vm1, %v652_v6, 0.0  ;;  %v700_v31 = vsel %vm2652_vm2, %v653_v2, 0.0  ;;  %vm2658_vm15 = vmmov %vm2651_vm1 }
 0x1c3   : > { %v915_v42 = vrot.slane %v914_v53, 1  ;;  %v694_v54 = vrot.slane %v693_v62, 4  ;;  %v701_v55 = vrot.slane %v700_v31, 4  ;;  %v623_v34 = vsub.f32 %v1941_v25, %v1922_v45 }
 0x1c4   : > { %v719_v59 = vrot.slane %v718_v0, 1  ;;  %v2240_v32 = vadd.f32 %v908_v17, %v907_v18  ;;  %v657_v10 = vmul.f32 %v617_v28, %v617_v28  ;;  %v658_v12 = vmul.f32 %v618_v35, %v618_v35  ;;  %v2251_v13 = vpop.eup %1563 }
 0x1c5   : > { %v2244_v5 = vadd.f32 %v915_v42, %v914_v53  ;;  %v624_v1 = vsub.f32 %v1936_v57, %v1930_v36  ;;  %v625_v14 = vsub.f32 %v1941_v25, %v1930_v36  ;;  %v626_v15 = vsub.f32 %v1936_v57, %v527_v63  ;;  %v2259_v19 = vpop.eup %1565 }
 0x1c6   : > { %v2246_v3 = vadd.f32 %v719_v59, %v718_v0  ;;  %1567 = vrsqrt.f32 %v2240_v32  ;;  %v627_v45 = vsub.f32 %v1941_v25, %v527_v63  ;;  %v659_v20 = vmul.f32 %v619_v58, %v619_v58 }
 0x1c7   : > { %1569 = vrsqrt.f32 %v2244_v5  ;;  %v660_v4 = vmul.f32 %v620_v26, %v620_v26  ;;  %v695_v22 = vadd.f32 %v694_v54, %v693_v62  ;;  %v702_v23 = vadd.f32 %v701_v55, %v700_v31 }
 0x1c8   : > { %1571 = vrsqrt.f32 %v2246_v3  ;;  %v707_v24 = vsel %vm2653_vm4, %v654_v61, 0.0  ;;  %v721_v37 = vsel %vm2654_vm6, %v656_v60, 0.0  ;;  %v728_v39 = vsel %vm2655_vm9, %v657_v10, 0.0 }
 0x1c9   : > { %v708_v36 = vrot.slane %v707_v24, 4  ;;  %v722_v38 = vrot.slane %v721_v37, 4  ;;  %v735_v50 = vsel %vm2656_vm10, %v658_v12, 0.0  ;;  %v661_v11 = vmul.f32 %v621_v21, %v621_v21  ;;  %vm2659_vm10 = vmmov %vm2654_vm6 }
 0x1ca   : > { %v2268_v9 = vmul.f32 %v622_v41, %v622_v41  ;;  %v696_v40 = vrot.slane %v695_v22, 2  ;;  %v703_v8 = vrot.slane %v702_v23, 2  ;;  %vm2637_vm11 = vcmask 1047559  }
 0x1cb   : > { %v2270_v29 = vmul.f32 %v623_v34, %v623_v34  ;;  %v2272_v16 = vmul.f32 %v624_v1, %v624_v1  ;;  %v709_v43 = vadd.f32 %v708_v36, %v707_v24  ;;  %v729_v27 = vrot.slane %v728_v39, 4 }
 0x1cc   : > { %v2279_v18 = vmul.f32 %v625_v14, %v625_v14  ;;  %v2281_v46 = vmul.f32 %v626_v15, %v626_v15  ;;  %v723_v6 = vadd.f32 %v722_v38, %v721_v37  ;;  %v736_v2 = vrot.slane %v735_v50, 4 }
 0x1cd   : > { %vm1185_vm14 = vcmp.eq.f32.partialorder %v2240_v32, inf  ;;  %vm1187_vm0 = vcmp.eq.f32.partialorder %v2240_v32, 0.0  ;;  %v2285_v53 = vmul.f32 %v627_v45, %v627_v45  ;;  %v697_v0 = vadd.f32 %v696_v40, %v695_v22 }
 0x1ce   : > { %v1188_v28 = vand.u32 2147483648, %v2240_v32  ;;  %v704_v35 = vadd.f32 %v703_v8, %v702_v23  ;;  %v742_v17 = vsel %vm2657_vm13, %v659_v20, 0.0  ;;  %v749_v58 = vsel %vm2658_vm15, %v660_v4, 0.0 }
 0x1cf   : > { %vm1192_vm1 = vcmp.eq.f32.partialorder %v2244_v5, inf  ;;  %vm1194_vm2 = vcmp.eq.f32.partialorder %v2244_v5, 0.0  ;;  %v710_v21 = vrot.slane %v709_v43, 2  ;;  %v730_v42 = vadd.f32 %v729_v27, %v728_v39 }
 0x1d0   : > { %v1568_v26 = vpop.eup %1567  ;;  %v1195_v61 = vand.u32 2147483648, %v2244_v5  ;;  %v724_v63 = vrot.slane %v723_v6, 2  ;;  %v737_v60 = vadd.f32 %v736_v2, %v735_v50  ;;  %v698_v54 = vrot.slane %v697_v0, 1 }
 0x1d1   : > { %v1570_v59 = vpop.eup %1569  ;;  %v1184_v41 = vmul.f32 %v1568_v26, %v2240_v32  ;;  %v743_v55 = vrot.slane %v742_v17, 4  ;;  %v750_v34 = vrot.slane %v749_v58, 4  ;;  %vm996_vm4 = vcmp.eq.f32.partialorder %v2246_v3, inf }
 0x1d2   : > { %v1572_v62 = vpop.eup %1571  ;;  %v1191_v31 = vmul.f32 %v1570_v59, %v2244_v5  ;;  %v999_v12 = vand.u32 2147483648, %v2246_v3  ;;  %v705_v1 = vrot.slane %v704_v35, 1  ;;  %v711_v45 = vadd.f32 %v710_v21, %v709_v43 }
 0x1d3   : > { %v1186_v10 = vsel %vm1185_vm14, %v2240_v32, %v1184_v41  ;;  %v731_v20 = vrot.slane %v730_v42, 2  ;;  %v725_v32 = vadd.f32 %v724_v63, %v723_v6  ;;  %v738_v23 = vrot.slane %v737_v60, 2  ;;  %vm2660_vm14 = vmmov %vm2654_vm6 }
 0x1d4   : > { %v1189_v14 = vsel %vm1187_vm0, %v1188_v28, %v1186_v10  ;;  %v1193_v15 = vsel %vm1192_vm1, %v2244_v5, %v1191_v31  ;;  %v2315_v37 = vadd.f32 %v698_v54, %v697_v0  ;;  %v744_v36 = vadd.f32 %v743_v55, %v742_v17  ;;  %vm2661_vm0 = vmmov %vm2654_vm6 }
 0x1d5   : > { %v1196_v4 = vsel %vm1194_vm2, %v1195_v61, %v1193_v15  ;;  %v1285_v22 = vmul.f32 %v2013_v44, %v1189_v14  ;;  %v751_v38 = vadd.f32 %v750_v34, %v749_v58  ;;  %v995_v50 = vmul.f32 %v1572_v62, %v2246_v3  ;;  %vm2662_vm13 = vmmov %vm2661_vm0 }
 0x1d6   : > { %v1286_v24 = vmul.f32 %v2013_v44, %v1196_v4  ;;  %v2320_v40 = vadd.f32 %v705_v1, %v704_v35  ;;  %v756_v5 = vsel %vm2654_vm6, %v661_v11, 0.0  ;;  %v712_v43 = vrot.slane %v711_v45, 1  ;;  %vm2663_vm15 = vmmov %vm2661_vm0 }
 0x1d7   : > { %v1362_v39 = vsel %vm2637_vm11, %v1285_v22, %v2219_v51  ;;  %v732_v27 = vadd.f32 %v731_v20, %v730_v42  ;;  %v757_v6 = vrot.slane %v756_v5, 4  ;;  %vm998_vm9 = vcmp.eq.f32.partialorder %v2246_v3, 0.0  ;;  %vm2664_vm1 = vmmov %vm2661_vm0 }
 0x1d8   : > { %v1369_v8 = vsel %vm2637_vm11, %v1286_v24, %v2222_v47  ;;  %1384 = vst [vmem:[%s2309_s19 + $0x10] sm:$0xff] %v1362_v39  ;;  %v739_v2 = vadd.f32 %v738_v23, %v737_v60  ;;  %v763_v51 = vsel %vm2659_vm10, %v2268_v9, 0.0  ;;  %v770_v0 = vsel %vm2660_vm14, %v2270_v29, 0.0 }
 0x1d9   : > { %1385 = vst [vmem:[%s2309_s19 + $0x18] sm:$0xff] %v1369_v8  ;;  %v777_v11 = vsel %vm2661_vm0, %v2272_v16, 0.0  ;;  %v745_v28 = vrot.slane %v744_v36, 2  ;;  %v758_v35 = vadd.f32 %v757_v6, %v756_v5  ;;  %v764_v47 = vrot.slane %v763_v51, 4 }
 0x1da   : > { %v771_v17 = vrot.slane %v770_v0, 4  ;;  %v997_v58 = vsel %vm996_vm4, %v2246_v3, %v995_v50  ;;  %v778_v26 = vrot.slane %v777_v11, 4  ;;  %v784_v21 = vsel %vm2662_vm13, %v2279_v18, 0.0 }
 0x1db   : > { %v791_v9 = vsel %vm2663_vm15, %v2281_v46, 0.0  ;;  %v752_v42 = vrot.slane %v751_v38, 2  ;;  %v765_v29 = vadd.f32 %v764_v47, %v763_v51  ;;  %v785_v41 = vrot.slane %v784_v21, 4 }
 0x1dc   : > { %v772_v59 = vadd.f32 %v771_v17, %v770_v0  ;;  %v759_v16 = vrot.slane %v758_v35, 2  ;;  %v779_v61 = vadd.f32 %v778_v26, %v777_v11  ;;  %v792_v63 = vrot.slane %v791_v9, 4 }
 0x1dd   : > { %v798_v60 = vsel %vm2664_vm1, %v2285_v53, 0.0  ;;  %v746_v62 = vadd.f32 %v745_v28, %v744_v36  ;;  %v766_v31 = vrot.slane %v765_v29, 2  ;;  %v786_v55 = vadd.f32 %v785_v41, %v784_v21 }
 0x1de   : > { %v773_v54 = vrot.slane %v772_v59, 2  ;;  %v780_v34 = vrot.slane %v779_v61, 2  ;;  %v793_v10 = vadd.f32 %v792_v63, %v791_v9  ;;  %v799_v18 = vrot.slane %v798_v60, 4 }
 0x1df   : > { %1573 = vrsqrt.f32 %v2315_v37  ;;  %v726_v46 = vrot.slane %v725_v32, 1  ;;  %v733_v1 = vrot.slane %v732_v27, 1  ;;  %v753_v14 = vadd.f32 %v752_v42, %v751_v38 }
 0x1e0   : > { %v787_v15 = vrot.slane %v786_v55, 2  ;;  %v2344_v20 = vadd.f32 %v712_v43, %v711_v45  ;;  %v760_v4 = vadd.f32 %v759_v16, %v758_v35  ;;  %v794_v22 = vrot.slane %v793_v10, 2 }
 0x1e1   : > { %v800_v23 = vadd.f32 %v799_v18, %v798_v60  ;;  %v1000_v53 = vsel %vm998_vm9, %v999_v12, %v997_v58  ;;  %v740_v24 = vrot.slane %v739_v2, 1  ;;  %v767_v36 = vadd.f32 %v766_v31, %v765_v29 }
 0x1e2   : > { %v774_v39 = vadd.f32 %v773_v54, %v772_v59  ;;  %v747_v50 = vrot.slane %v746_v62, 1  ;;  %v781_v5 = vadd.f32 %v780_v34, %v779_v61  ;;  %v788_v8 = vadd.f32 %v787_v15, %v786_v55 }
 0x1e3   : > { %v801_v6 = vrot.slane %v800_v23, 2  ;;  %v2353_v45 = vadd.f32 %v950_v30, %v2020_v49  ;;  %v2355_v38 = vadd.f32 %v726_v46, %v725_v32  ;;  %v754_v43 = vrot.slane %v753_v14, 1 }
 0x1e4   : > { %v795_v51 = vadd.f32 %v794_v22, %v793_v10  ;;  %v2357_v0 = vadd.f32 %v733_v1, %v732_v27  ;;  %v761_v3 = vrot.slane %v760_v4, 1  ;;  %1575 = vrsqrt.f32 %v2320_v40 }
 0x1e5   : > { %v802_v12 = vadd.f32 %v801_v6, %v800_v23  ;;  %v2361_v11 = vmul.f32 %v2013_v44, %v1000_v53  ;;  %v2363_v28 = vadd.f32 %v740_v24, %v739_v2  ;;  %v768_v35 = vrot.slane %v767_v36, 1 }
 0x1e6   : > { %v775_v47 = vrot.slane %v774_v39, 1  ;;  %v2365_v17 = vadd.f32 %v747_v50, %v746_v62  ;;  %v782_v49 = vrot.slane %v781_v5, 1  ;;  %v789_v30 = vrot.slane %v788_v8, 1 }
 0x1e7   : > { %1577 = vrsqrt.f32 %v2344_v20  ;;  %v2368_v32 = vadd.f32 %v754_v43, %v753_v14  ;;  %v796_v27 = vrot.slane %v795_v51, 1  ;;  %vm975_vm2 = vcmp.eq.f32.partialorder %v2315_v37, inf }
 0x1e8   : > { %1579 = vrsqrt.f32 %v2355_v38  ;;  %v2372_v26 = vadd.f32 %v761_v3, %v760_v4  ;;  %v803_v2 = vrot.slane %v802_v12, 1  ;;  %vm977_vm4 = vcmp.eq.f32.partialorder %v2315_v37, 0.0 }
 0x1e9   : > { %v1574_v58 = vpop.eup %1573  ;;  %1581 = vrsqrt.f32 %v2357_v0  ;;  %v2376_v21 = vadd.f32 %v768_v35, %v767_v36  ;;  %v2378_v9 = vadd.f32 %v775_v47, %v774_v39  ;;  %v978_v29 = vand.u32 2147483648, %v2315_v37 }
 0x1ea   : > { %v974_v42 = vmul.f32 %v1574_v58, %v2315_v37  ;;  %v2382_v59 = vadd.f32 %v782_v49, %v781_v5  ;;  %v2384_v41 = vadd.f32 %v789_v30, %v788_v8  ;;  %vm982_vm6 = vcmp.eq.f32.partialorder %v2320_v40, inf }
 0x1eb   : > { %1583 = vrsqrt.f32 %v2363_v28  ;;  %v2388_v16 = vadd.f32 %v796_v27, %v795_v51  ;;  %v985_v61 = vand.u32 2147483648, %v2320_v40  ;;  %vm989_vm9 = vcmp.eq.f32.partialorder %v2344_v20, inf }
 0x1ec   : > { %1585 = vrsqrt.f32 %v2365_v17  ;;  %v2393_v63 = vadd.f32 %v803_v2, %v802_v12  ;;  %vm984_vm10 = vcmp.eq.f32.partialorder %v2320_v40, 0.0  ;;  %v992_v60 = vand.u32 2147483648, %v2344_v20 }
 0x1ed   : > { %vm1003_vm14 = vcmp.eq.f32.partialorder %v2355_v38, inf  ;;  %1587 = vrsqrt.f32 %v2368_v32  ;;  %v976_v62 = vsel %vm975_vm2, %v2315_v37, %v974_v42  ;;  %vm991_vm0 = vcmp.eq.f32.partialorder %v2344_v20, 0.0 }
 0x1ee   : > { %vm1005_vm13 = vcmp.eq.f32.partialorder %v2355_v38, 0.0  ;;  %v1006_v31 = vand.u32 2147483648, %v2355_v38  ;;  %vm1010_vm15 = vcmp.eq.f32.partialorder %v2357_v0, inf  ;;  %1589 = vrsqrt.f32 %v2372_v26  ;;  %v1576_v54 = vpop.eup %1575 }
 0x1ef   : > { %vm1012_vm1 = vcmp.eq.f32.partialorder %v2357_v0, 0.0  ;;  %v1013_v55 = vand.u32 2147483648, %v2357_v0  ;;  %vm1017_vm11 = vcmp.eq.f32.partialorder %v2363_v28, inf  ;;  %1591 = vrsqrt.f32 %v2376_v21 }
 0x1f0   : > { %v981_v34 = vmul.f32 %v1576_v54, %v2320_v40  ;;  %vm1019_vm2 = vcmp.eq.f32.partialorder %v2363_v28, 0.0  ;;  %v1020_v10 = vand.u32 2147483648, %v2363_v28  ;;  %vm1024_vm7 = vcmp.eq.f32.partialorder %v2365_v17, inf }
 0x1f1   : > { %1593 = vrsqrt.f32 %v2378_v9  ;;  %v1578_v18 = vpop.eup %1577  ;;  %v979_v46 = vsel %vm977_vm4, %v978_v29, %v976_v62  ;;  %vm1026_vm3 = vcmp.eq.f32.partialorder %v2365_v17, 0.0  ;;  %v1027_v1 = vand.u32 2147483648, %v2365_v17 }
 0x1f2   : > { %1595 = vrsqrt.f32 %v2382_v59  ;;  %v1580_v14 = vpop.eup %1579  ;;  %v988_v15 = vmul.f32 %v1578_v18, %v2344_v20  ;;  %vm1033_vm8 = vcmp.eq.f32.partialorder %v2368_v32, 0.0  ;;  %v1034_v4 = vand.u32 2147483648, %v2368_v32 }
 0x1f3   : > { %v1041_v37 = vand.u32 2147483648, %v2372_v26  ;;  %v1582_v22 = vpop.eup %1581  ;;  %v983_v23 = vsel %vm982_vm6, %v2320_v40, %v981_v34  ;;  %v1002_v53 = vmul.f32 %v1580_v14, %v2355_v38  ;;  %1597 = vrsqrt.f32 %v2384_v41 }
 0x1f4   : > { %v990_v24 = vsel %vm989_vm9, %v2344_v20, %v988_v15  ;;  %v1009_v36 = vmul.f32 %v1582_v22, %v2357_v0  ;;  %vm1047_vm5 = vcmp.eq.f32.partialorder %v2376_v21, 0.0  ;;  %v1048_v39 = vand.u32 2147483648, %v2376_v21 }
 0x1f5   : > { %vm1052_vm6 = vcmp.eq.f32.partialorder %v2378_v9, inf  ;;  %v1584_v50 = vpop.eup %1583  ;;  %v1004_v5 = vsel %vm1003_vm14, %v2355_v38, %v1002_v53  ;;  %vm1054_vm12 = vcmp.eq.f32.partialorder %v2378_v9, 0.0  ;;  %v1055_v8 = vand.u32 2147483648, %v2378_v9 }
 0x1f6   : > { %vm1059_vm4 = vcmp.eq.f32.partialorder %v2382_v59, inf  ;;  %1599 = vrsqrt.f32 %v2388_v16  ;;  %v1586_v6 = vpop.eup %1585  ;;  %v986_v43 = vsel %vm984_vm10, %v985_v61, %v983_v23  ;;  %v1011_v51 = vsel %vm1010_vm15, %v2357_v0, %v1009_v36 }
 0x1f7   : > { %v1016_v3 = vmul.f32 %v1584_v50, %v2363_v28  ;;  %vm1061_vm9 = vcmp.eq.f32.partialorder %v2382_v59, 0.0  ;;  %v1062_v12 = vand.u32 2147483648, %v2382_v59  ;;  %v1588_v35 = vpop.eup %1587  ;;  %v993_v47 = vsel %vm991_vm0, %v992_v60, %v990_v24 }
 0x1f8   : > { %v1007_v49 = vsel %vm1005_vm13, %v1006_v31, %v1004_v5  ;;  %v1023_v40 = vmul.f32 %v1586_v6, %v2365_v17  ;;  %vm1066_vm10 = vcmp.eq.f32.partialorder %v2384_v41, inf  ;;  %v1069_v30 = vand.u32 2147483648, %v2384_v41  ;;  %v1590_v27 = vpop.eup %1589 }
 0x1f9   : > { %v1014_v58 = vsel %vm1012_vm1, %v1013_v55, %v1011_v51  ;;  %v1018_v2 = vsel %vm1017_vm11, %v2363_v28, %v1016_v3  ;;  %v1030_v20 = vmul.f32 %v1588_v35, %v2368_v32  ;;  %vm1068_vm14 = vcmp.eq.f32.partialorder %v2384_v41, 0.0  ;;  %v1592_v38 = vpop.eup %1591 }
 0x1fa   : > { %1601 = vrsqrt.f32 %v2393_v63  ;;  %v1021_v42 = vsel %vm1019_vm2, %v1020_v10, %v1018_v2  ;;  %v1025_v29 = vsel %vm1024_vm7, %v2365_v17, %v1023_v40  ;;  %v1037_v0 = vmul.f32 %v1590_v27, %v2372_v26 }
 0x1fb   : > { %vm1073_vm0 = vcmp.eq.f32.partialorder %v2388_v16, inf  ;;  %v1076_v61 = vand.u32 2147483648, %v2388_v16  ;;  %v1594_v60 = vpop.eup %1593  ;;  %v1028_v62 = vsel %vm1026_vm3, %v1027_v1, %v1025_v29  ;;  %vm2665_vm11 = vcmp.eq.f32.partialorder %v2368_v32, inf }
 0x1fc   : > { %v1032_v31 = vsel %vm2665_vm11, %v2368_v32, %v1030_v20  ;;  %v1044_v28 = vmul.f32 %v1592_v38, %v2376_v21  ;;  %vm1075_vm13 = vcmp.eq.f32.partialorder %v2388_v16, 0.0  ;;  %v1083_v54 = vand.u32 2147483648, %v2393_v63  ;;  %v1596_v55 = vpop.eup %1595 }
 0x1fd   : > { %v1035_v34 = vsel %vm1033_vm8, %v1034_v4, %v1032_v31  ;;  %vm2666_vm7 = vcmp.eq.f32.partialorder %v2372_v26, inf  ;;  %v1051_v17 = vmul.f32 %v1594_v60, %v2378_v9  ;;  %v1255_v18 = vmul.f32 %v2013_v44, %v979_v46  ;;  %v1598_v4 = vpop.eup %1597  ;;  %v611_v60 = vpop.permute.xlu1 %610 }
 0x1fe   : > { %v1039_v10 = vsel %vm2666_vm7, %v2372_v26, %v1037_v0  ;;  %vm2667_vm3 = vcmp.eq.f32.partialorder %v2372_v26, 0.0  ;;  %vm2668_vm15 = vcmp.eq.f32.partialorder %v2376_v21, inf  ;;  %v1058_v15 = vmul.f32 %v1596_v55, %v2382_v59 }
 0x1ff   : > { %v1042_v1 = vsel %vm2667_vm3, %v1041_v37, %v1039_v10  ;;  %v1046_v14 = vsel %vm2668_vm15, %v2376_v21, %v1044_v28  ;;  %vm1080_vm1 = vcmp.eq.f32.partialorder %v2393_v63, inf  ;;  %v1256_v32 = vmul.f32 %v2013_v44, %v986_v43 }
 0x200   : > { %v1049_v22 = vsel %vm1047_vm5, %v1048_v39, %v1046_v14  ;;  %v1053_v46 = vsel %vm1052_vm6, %v2378_v9, %v1051_v17  ;;  %vm1082_vm8 = vcmp.eq.f32.partialorder %v2393_v63, 0.0  ;;  %v1257_v26 = vmul.f32 %v2013_v44, %v993_v47  ;;  %v1600_v36 = vpop.eup %1599 }
 0x201   : > { %v1259_v37 = vmul.f32 %v2013_v44, %v1007_v49  ;;  %v1056_v23 = vsel %vm1054_vm12, %v1055_v8, %v1053_v46  ;;  %v1060_v53 = vsel %vm1059_vm4, %v2382_v59, %v1058_v15  ;;  %v1065_v21 = vmul.f32 %v1598_v4, %v2384_v41 }
 0x202   : > { %v1260_v24 = vmul.f32 %v2013_v44, %v1014_v58  ;;  %v1063_v39 = vsel %vm1061_vm9, %v1062_v12, %v1060_v53  ;;  %v1261_v50 = vmul.f32 %v2013_v44, %v1021_v42  ;;  %v1262_v5 = vmul.f32 %v2013_v44, %v1028_v62 }
 0x203   : > { %v1263_v6 = vmul.f32 %v2013_v44, %v1035_v34  ;;  %v1067_v9 = vsel %vm1066_vm10, %v2384_v41, %v1065_v21  ;;  %v1072_v8 = vmul.f32 %v1600_v36, %v2388_v16  ;;  %v1264_v43 = vmul.f32 %v2013_v44, %v1042_v1 }
 0x204   : > { %v1265_v51 = vmul.f32 %v2013_v44, %v1049_v22  ;;  %v1070_v59 = vsel %vm1068_vm14, %v1069_v30, %v1067_v9  ;;  %v1266_v3 = vmul.f32 %v2013_v44, %v1056_v23  ;;  %v1267_v12 = vmul.f32 %v2013_v44, %v1063_v39  ;;  %v1602_v47 = vpop.eup %1601 }
 0x205   : > { %vm2669_vm5 = vcmask 1041409   ;;  %v1074_v49 = vsel %vm1073_vm0, %v2388_v16, %v1072_v8  ;;  %v1268_v40 = vmul.f32 %v2013_v44, %v1070_v59  ;;  %vm2670_vm12 = vcmask 1042434  }
 0x206   : > { %v1336_v35 = vsel %vm2669_vm5, %v1257_v26, %v1255_v18  ;;  %vm2671_vm2 = vmmov %vm2669_vm5  ;;  %v1077_v41 = vsel %vm1075_vm13, %v1076_v61, %v1074_v49  ;;  %v1079_v30 = vmul.f32 %v1602_v47, %v2393_v63  ;;  %vm2672_vm4 = vcmask 1043459  }
 0x207   : > { %v1338_v27 = vsel %vm2670_vm12, %v1259_v37, %v1336_v35  ;;  %v1349_v58 = vsel %vm2671_vm2, %v2361_v11, %v1256_v32  ;;  %vm2673_vm6 = vmmov %vm2670_vm12  ;;  %v1269_v38 = vmul.f32 %v2013_v44, %v1077_v41  ;;  %vm2674_vm9 = vcmask 1044484  }
 0x208   : > { %v1340_v2 = vsel %vm2672_vm4, %v1261_v50, %v1338_v27  ;;  %v1350_v20 = vsel %vm2673_vm6, %v1260_v24, %v1349_v58  ;;  %vm2675_vm10 = vmmov %vm2672_vm4  ;;  %v647_v0 = vsub.f32 %v1941_v25, %v1924_v56  ;;  %v1081_v11 = vsel %vm1080_vm1, %v2393_v63, %v1079_v30 }
 0x209   : > { %v1342_v42 = vsel %vm2674_vm9, %v1263_v6, %v1340_v2  ;;  %v1351_v29 = vsel %vm2675_vm10, %v1262_v5, %v1350_v20  ;;  %vm2676_vm14 = vcmask 1045509   ;;  %vm2677_vm0 = vmmov %vm2674_vm9  ;;  %v645_v62 = vsub.f32 %v1941_v25, %v1926_v33 }
 0x20a   : > { %v1344_v16 = vsel %vm2676_vm14, %v1265_v51, %v1342_v42  ;;  %v1352_v61 = vsel %vm2677_vm0, %v1264_v43, %v1351_v29  ;;  %v1084_v31 = vsel %vm1082_vm8, %v1083_v54, %v1081_v11  ;;  %vm2678_vm11 = vcmask 1046534   ;;  %vm2679_vm13 = vmmov %vm2676_vm14 }
 0x20b   : > { %v1346_v28 = vsel %vm2678_vm11, %v1267_v12, %v1344_v16  ;;  %v1353_v56 = vsel %vm2679_vm13, %v1266_v3, %v1352_v61  ;;  %v687_v55 = vmul.f32 %v647_v0, %v647_v0  ;;  %v1270_v34 = vmul.f32 %v2013_v44, %v1084_v31  ;;  %vm2681_vm3 = vmmov %vm2678_vm11 }
 0x20c   : > { %vm2680_vm7 = vcmask 1047559   ;;  %v1354_v17 = vsel %vm2681_vm3, %v1268_v40, %v1353_v56  ;;  %v649_v18 = vsub.f32 %v1941_v25, %v1947_v7  ;;  %vm2682_vm15 = vcmask 1043456  }
 0x20d   : > { %v1348_v10 = vsel %vm2680_vm7, %v1269_v38, %v1346_v28  ;;  %v938_v33 = vsel %vm2682_vm15, %v687_v55, 0.0  ;;  %v650_v63 = vsub.f32 %v1936_v57, %v611_v60  ;;  %v651_v54 = vsub.f32 %v1941_v25, %v611_v60  ;;  %vm2683_vm1 = vmmov %vm2680_vm7 }
 0x20e   : > { %1382 = vst [vmem:[%s2309_s19] sm:$0xff] %v1348_v10  ;;  %v685_v1 = vmul.f32 %v645_v62, %v645_v62  ;;  %v1355_v14 = vsel %vm2683_vm1, %v1270_v34, %v1354_v17  ;;  %v939_v15 = vrot.slane %v938_v33, 4  ;;  %v689_v32 = vmul.f32 %v649_v18, %v649_v18  ;;  %vm2684_vm8 = vmmov %vm2682_vm15 }
 0x20f   : > { %1603 = vrsqrt.f32 %v2353_v45  ;;  %1383 = vst [vmem:[%s2309_s19 + $0x8] sm:$0xff] %v1355_v14  ;;  %v690_v4 = vmul.f32 %v650_v63, %v650_v63  ;;  %v691_v22 = vmul.f32 %v651_v54, %v651_v54  ;;  %vm2685_vm5 = vmmov %vm2684_vm8  ;;  %v1198_v41 = vmul.f32 %v2251_v13, %v2017_v48 }
 0x210   : > { %v924_v46 = vsel %vm2684_vm8, %v685_v1, 0.0  ;;  %v940_v7 = vadd.f32 %v939_v15, %v938_v33  ;;  %v952_v37 = vsel %vm2685_vm5, %v689_v32, 0.0  ;;  %vm2686_vm12 = vmmov %vm2685_vm5  ;;  %v1212_v30 = vmul.f32 %v2259_v19, %v2025_v52 }
 0x211   : > { %v925_v26 = vrot.slane %v924_v46, 4  ;;  %v953_v23 = vrot.slane %v952_v37, 4  ;;  %v959_v57 = vsel %vm2686_vm12, %v690_v4, 0.0  ;;  %vm2687_vm2 = vmmov %vm2685_vm5  ;;  %vm1199_vm4 = vcmp.eq.f32.partialorder %v2017_v48, inf }
 0x212   : > { %v966_v25 = vsel %vm2687_vm2, %v691_v22, 0.0  ;;  %v941_v53 = vrot.slane %v940_v7, 2  ;;  %v960_v24 = vrot.slane %v959_v57, 4  ;;  %vm1213_vm6 = vcmp.eq.f32.partialorder %v2025_v52, inf }
 0x213   : > { %v926_v21 = vadd.f32 %v925_v26, %v924_v46  ;;  %v967_v36 = vrot.slane %v966_v25, 4  ;;  %v954_v39 = vadd.f32 %v953_v23, %v952_v37  ;;  %v1200_v13 = vsel %vm1199_vm4, %v2017_v48, %v1198_v41 }
 0x214   : > { %v942_v50 = vadd.f32 %v941_v53, %v940_v7  ;;  %v961_v6 = vadd.f32 %v960_v24, %v959_v57  ;;  %v1214_v19 = vsel %vm1213_vm6, %v2025_v52, %v1212_v30  ;;  %vm1227_vm9 = vcmp.eq.f32.partialorder %v2353_v45, inf }
 0x215   : > { %v927_v5 = vrot.slane %v926_v21, 2  ;;  %v968_v9 = vadd.f32 %v967_v36, %v966_v25  ;;  %v955_v8 = vrot.slane %v954_v39, 2  ;;  %v1202_v16 = vand.u32 2147483648, %v2017_v48 }
 0x216   : > { %v943_v43 = vrot.slane %v942_v50, 1  ;;  %v962_v59 = vrot.slane %v961_v6, 2  ;;  %v1216_v61 = vand.u32 2147483648, %v2025_v52  ;;  %vm1201_vm10 = vcmp.eq.f32.partialorder %v2017_v48, 0.0 }
 0x217   : > { %v928_v51 = vadd.f32 %v927_v5, %v926_v21  ;;  %v969_v3 = vrot.slane %v968_v9, 2  ;;  %v956_v12 = vadd.f32 %v955_v8, %v954_v39  ;;  %vm1215_vm14 = vcmp.eq.f32.partialorder %v2025_v52, 0.0 }
 0x218   : > { %v944_v35 = vadd.f32 %v943_v43, %v942_v50  ;;  %v963_v49 = vadd.f32 %v962_v59, %v961_v6  ;;  %v1230_v62 = vand.u32 2147483648, %v2353_v45  ;;  %v1203_v31 = vsel %vm1201_vm10, %v1202_v16, %v1200_v13 }
 0x219   : > { %v929_v47 = vrot.slane %v928_v51, 1  ;;  %v970_v40 = vadd.f32 %v969_v3, %v968_v9  ;;  %v1604_v27 = vpop.eup %1603  ;;  %v957_v58 = vrot.slane %v956_v12, 1  ;;  %v1217_v28 = vsel %vm1215_vm14, %v1216_v61, %v1214_v19 }
 0x21a   : > { %1605 = vrsqrt.f32 %v944_v35  ;;  %v964_v38 = vrot.slane %v963_v49, 1  ;;  %v1226_v29 = vmul.f32 %v1604_v27, %v2353_v45  ;;  %vm1229_vm0 = vcmp.eq.f32.partialorder %v2353_v45, 0.0 }
 0x21b   : > { %v930_v2 = vadd.f32 %v929_v47, %v928_v51  ;;  %v958_v20 = vadd.f32 %v957_v58, %v956_v12  ;;  %v971_v42 = vrot.slane %v970_v40, 1  ;;  %v1287_v34 = vmul.f32 %v2013_v44, %v1203_v31 }
 0x21c   : > { %v965_v0 = vadd.f32 %v964_v38, %v963_v49  ;;  %v1228_v60 = vsel %vm1227_vm9, %v2353_v45, %v1226_v29  ;;  %v1289_v10 = vmul.f32 %v2013_v44, %v1217_v28  ;;  %vm1220_vm11 = vcmp.eq.f32.partialorder %v944_v35, inf }
 0x21d   : > { %v2582_v11 = vadd.f32 %v971_v42, %v970_v40  ;;  %1607 = vrsqrt.f32 %v930_v2  ;;  %v1231_v56 = vsel %vm1229_vm0, %v1230_v62, %v1228_v60  ;;  %vm1222_vm13 = vcmp.eq.f32.partialorder %v944_v35, 0.0 }
 0x21e   : > { %1609 = vrsqrt.f32 %v958_v20  ;;  %v1291_v18 = vmul.f32 %v2013_v44, %v1231_v56  ;;  %v1223_v48 = vand.u32 2147483648, %v944_v35  ;;  %vm1206_vm7 = vcmp.eq.f32.partialorder %v930_v2, inf }
 0x21f   : > { %1611 = vrsqrt.f32 %v965_v0  ;;  %vm1208_vm3 = vcmp.eq.f32.partialorder %v930_v2, 0.0  ;;  %v1209_v63 = vand.u32 2147483648, %v930_v2  ;;  %vm1234_vm15 = vcmp.eq.f32.partialorder %v958_v20, inf }
 0x220   : > { %1613 = vrsqrt.f32 %v2582_v11  ;;  %vm1236_vm1 = vcmp.eq.f32.partialorder %v958_v20, 0.0  ;;  %v1237_v32 = vand.u32 2147483648, %v958_v20  ;;  %vm1241_vm8 = vcmp.eq.f32.partialorder %v965_v0, inf }
 0x221   : > { %vm1243_vm5 = vcmp.eq.f32.partialorder %v965_v0, 0.0  ;;  %v1244_v26 = vand.u32 2147483648, %v965_v0  ;;  %vm1248_vm12 = vcmp.eq.f32.partialorder %v2582_v11, inf  ;;  %v1251_v21 = vand.u32 2147483648, %v2582_v11 }
 0x222   : > { %vm1250_vm2 = vcmp.eq.f32.partialorder %v2582_v11, 0.0  ;;  %vm2688_vm4 = vcmask 1041409   ;;  %vm2690_vm9 = vcmask 1042434   ;;  %vm2691_vm10 = vcmask 1043459  }
 0x223   : > { %v1370_v5 = vsel %vm2688_vm4, %v1289_v10, %v1287_v34  ;;  %vm2689_vm6 = vmmov %vm2688_vm4 }
 0x224   : > { %v1606_v55 = vpop.eup %1605  ;;  %v1371_v43 = vsel %vm2690_vm9, %v1291_v18, %v1370_v5  ;;  %vm2692_vm14 = vmmov %vm2690_vm9 }
 0x225   : > { %v1219_v17 = vmul.f32 %v1606_v55, %v944_v35  ;;  %vm2693_vm0 = vmmov %vm2691_vm10 }
 0x227   : > { %v1608_v33 = vpop.eup %1607  ;;  %v1221_v52 = vsel %vm1220_vm11, %v944_v35, %v1219_v17 }
 0x228   : > { %v1610_v54 = vpop.eup %1609  ;;  %v1224_v1 = vsel %vm1222_vm13, %v1223_v48, %v1221_v52  ;;  %v1205_v45 = vmul.f32 %v1608_v33, %v930_v2 }
 0x229   : > { %v1612_v14 = vpop.eup %1611  ;;  %v1233_v15 = vmul.f32 %v1610_v54, %v958_v20  ;;  %v1290_v22 = vmul.f32 %v2013_v44, %v1224_v1 }
 0x22a   : > { %v1614_v4 = vpop.eup %1613  ;;  %v1207_v46 = vsel %vm1206_vm7, %v930_v2, %v1205_v45  ;;  %v1240_v7 = vmul.f32 %v1612_v14, %v965_v0 }
 0x22b   : > { %v1210_v37 = vsel %vm1208_vm3, %v1209_v63, %v1207_v46  ;;  %v1235_v23 = vsel %vm1234_vm15, %v958_v20, %v1233_v15  ;;  %v1247_v57 = vmul.f32 %v1614_v4, %v2582_v11 }
 0x22c   : > { %v1238_v25 = vsel %vm1236_vm1, %v1237_v32, %v1235_v23  ;;  %v1242_v53 = vsel %vm1241_vm8, %v965_v0, %v1240_v7  ;;  %v1288_v24 = vmul.f32 %v2013_v44, %v1210_v37 }
 0x22d   : > { %v1245_v36 = vsel %vm1243_vm5, %v1244_v26, %v1242_v53  ;;  %v1249_v39 = vsel %vm1248_vm12, %v2582_v11, %v1247_v57  ;;  %v1292_v50 = vmul.f32 %v2013_v44, %v1238_v25 }
 0x22e   : > { %v1252_v6 = vsel %vm1250_vm2, %v1251_v21, %v1249_v39  ;;  %v1293_v9 = vmul.f32 %v2013_v44, %v1245_v36  ;;  %v1373_v8 = vsel %vm2689_vm6, %v1290_v22, %v1288_v24 }
 0x22f   : > { %v1294_v51 = vmul.f32 %v2013_v44, %v1252_v6  ;;  %v1374_v3 = vsel %vm2692_vm14, %v1292_v50, %v1373_v8 }
 0x230   : > { %v1372_v59 = vsel %vm2691_vm10, %v1293_v9, %v1371_v43 }
 0x231   : > { %v1375_v12 = vsel %vm2693_vm0, %v1294_v51, %v1374_v3  ;;  %1386 = vst [vmem:[%s2309_s19 + $0x20] sm:$0xf] %v1372_v59 }
 0x232   : > { %1387 = vst [vmem:[%s2309_s19 + $0x28] sm:$0xf] %v1375_v12 }
 0x233 PF: > { %p14_p8 = scmp.ge.s32.totalorder %s1739_s18, 4   ;;  %s2694_s14 = smov %s1671_s15 }
 0x234   : > { %s2695_s15 = smov %s1675_s16  ;;  %s2696_s16 = smov %s1749_s21 }
 0x235   : > { %s2697_s17 = smov %s1739_s18  ;;  %16 = sbr.rel (!%p14_p8) target bundleno = 5 (0x5), region = 72 }
 0x23c   :  { %1409 = vsyncpa [#allocation4], 1 }
 0x23d   :  { %1411 = vsyncpa [#allocation4 + $0x1], 1 }

</bundles_post_ra>
